<compile_context>
chip_gen: v7x
topology: tpu7x:2x2x1
jax: 0.10.0
libtpu: 0.0.40
codegen_flags: <defaults>
</compile_context>

<pallas_src>
import jax
import jax.numpy as jnp
from jax.experimental import pallas as pl
from jax.experimental.pallas import tpu as pltpu

N_HIDDEN = 32          # n_hidden global in the original script
N_HIDDEN_LAYERS = 6    # six Linear(H, H) + Tanh blocks after the first layer
TM = 512               # default batch rows (lanes) per grid step -- multiple of 128


def mlp_kernel(xT_ref, w0_ref, b0_ref, wh_ref, bh_ref, wf_ref, bf_ref, oT_ref):
    """Transposed MLP: activations are (H, TM) with the batch on lanes."""
    act_dtype = xT_ref.dtype

    xT = xT_ref[...]                     # (3, TM)
    w0 = w0_ref[...]                     # (H, 3)  PyTorch (out, in) layout
    b0 = b0_ref[...]                     # (H, 1)

    # --- First layer: K=3 is far too small to feed the MXU; 3 VPU broadcast-FMAs.
    pre = (b0
           + w0[:, 0:1] * xT[0:1, :]
           + w0[:, 1:2] * xT[1:2, :]
           + w0[:, 2:3] * xT[2:3, :])    # (H, TM)
    h = jnp.tanh(pre).astype(act_dtype)

    # --- Six hidden layers (statically unrolled).  Biases hoisted; weight tiles
    #     are tiny (32x32) and stay resident in VMEM across grid steps.
    bh_all = bh_ref[...]                 # (L, H, 1)
    for i in range(N_HIDDEN_LAYERS):
        acc = jnp.dot(wh_ref[i], h, preferred_element_type=jnp.float32)   # (H, TM) f32
        h = jnp.tanh((acc + bh_all[i]).astype(act_dtype))

    # --- Final layer: (2, H) @ (H, TM) + (2, 1) -> lane-dense (2, TM) store.
    out = jnp.dot(wf_ref[...], h, preferred_element_type=jnp.float32) + bf_ref[...]
    oT_ref[...] = out.astype(oT_ref.dtype)


def mlp_forward(x, params, *, tm=TM, compute_dtype=None):
    """x: (N, 3). params in PyTorch Linear layout: W (out, in), b (out, 1).

    compute_dtype=jnp.bfloat16 is recommended on v6e/v7x; keep float32 on v5e
    (its VPU/EUP have no bf16 fast path).
    """
    w0, b0, wh, bh, wf, bf = params
    N = x.shape[0]
    H = w0.shape[0]
    L = wh.shape[0]
    if compute_dtype is None:
        compute_dtype = x.dtype

    # Small-batch friendly tile: shrink to the next multiple of 128 when the whole
    # batch fits in less than one default tile (avoids padding tiny batches to 512).
    if N < tm:
        tile = max(128, ((N + 127) // 128) * 128)
    else:
        tile = tm

    # Pad the batch to a multiple of the row tile (padded rows sliced off at the end).
    pad = (-N) % tile
    if pad:
        x = jnp.pad(x, ((0, pad), (0, 0)))
    Np = N + pad

    # Put the batch on the lane axis: compute h^T = W @ x^T; output is (2, Np).
    xT = x.T.astype(compute_dtype)
    cast = lambda a: a.astype(compute_dtype)

    item = jnp.dtype(compute_dtype).itemsize
    flops = 2 * Np * (3 * H + L * H * H + H * 2)
    transcendentals = (L + 1) * H * Np
    bytes_accessed = (
        3 * Np * item                         # x^T in
        + 2 * Np * 4                          # o^T out (f32)
        + sum(int(a.size) * item for a in (w0, b0, wh, bh, wf, bf))
    )

    grid = (Np // tile,)
    outT = pl.pallas_call(
        mlp_kernel,
        out_shape=jax.ShapeDtypeStruct((2, Np), jnp.float32),
        grid_spec=pltpu.PrefetchScalarGridSpec(
            num_scalar_prefetch=0,
            grid=grid,
            in_specs=[
                pl.BlockSpec((3, tile), lambda i: (0, i)),      # x^T tile (streamed)
                pl.BlockSpec((H, 3), lambda i: (0, 0)),         # W0  (resident)
                pl.BlockSpec((H, 1), lambda i: (0, 0)),         # b0
                pl.BlockSpec((L, H, H), lambda i: (0, 0, 0)),   # W1..W6
                pl.BlockSpec((L, H, 1), lambda i: (0, 0, 0)),   # b1..b6
                pl.BlockSpec((2, H), lambda i: (0, 0)),         # W7
                pl.BlockSpec((2, 1), lambda i: (0, 0)),         # b7
            ],
            out_specs=pl.BlockSpec((2, tile), lambda i: (0, i)),
        ),
        compiler_params=pltpu.CompilerParams(
            dimension_semantics=("parallel",),   # shards grid steps over v7x's 2 TCs
        ),
        cost_estimate=pl.CostEstimate(
            flops=flops,
            transcendentals=transcendentals,
            bytes_accessed=bytes_accessed,
        ),
    )(xT, cast(w0), cast(b0), cast(wh), cast(bh), cast(wf), cast(bf))

    return outT[:, :N].T                 # back to (N, 2), float32


def init_params(key, H=N_HIDDEN):
    """PyTorch nn.Linear default init, stored in PyTorch (out, in) layout."""
    keys = jax.random.split(key, 16)

    def lin(kw, kb, fan_in, fan_out):
        bound = 1.0 / (fan_in ** 0.5)
        w = jax.random.uniform(kw, (fan_out, fan_in), jnp.float32, -bound, bound)
        b = jax.random.uniform(kb, (fan_out, 1), jnp.float32, -bound, bound)
        return w, b

    w0, b0 = lin(keys[0], keys[1], 3, H)
    wh_list, bh_list = [], []
    for l in range(N_HIDDEN_LAYERS):
        w, b = lin(keys[2 + 2 * l], keys[3 + 2 * l], H, H)
        wh_list.append(w)
        bh_list.append(b)
    wh = jnp.stack(wh_list, axis=0)       # (L, H, H)
    bh = jnp.stack(bh_list, axis=0)       # (L, H, 1)
    wf, bf = lin(keys[14], keys[15], H, 2)
    return w0, b0, wh, bh, wf, bf


def mlp_reference(x, params):
    w0, b0, wh, bh, wf, bf = params
    h = jnp.tanh(x @ w0.T + b0.T)
    for i in range(N_HIDDEN_LAYERS):
        h = jnp.tanh(h @ wh[i].T + bh[i].T)
    return h @ wf.T + bf.T


if __name__ == "__main__":
    key = jax.random.PRNGKey(0)
    kx, kp = jax.random.split(key)

    params = init_params(kp)

    # Batch deliberately NOT a multiple of TM (exercises wrapper padding) and
    # large enough for >= 2 grid steps so both v7x TensorCores get work.
    N = 1000
    x = jax.random.normal(kx, (N, 3), jnp.float32)
    ref = mlp_reference(x, params)

    out = jax.block_until_ready(mlp_forward(x, params))
    assert out.shape == (N, 2)
    # Tolerance allows for TPU default-matmul rounding differences between the
    # transposed in-kernel contraction and the XLA reference.
    assert jnp.allclose(out, ref, atol=5e-3, rtol=5e-3), "f32 mismatch vs reference"

    # Small-batch path (N < TM -> single 128-row padded tile, not 512).
    xs = x[:64]
    outs = jax.block_until_ready(mlp_forward(xs, params))
    assert outs.shape == (64, 2)
    assert jnp.allclose(outs, ref[:64], atol=5e-3, rtol=5e-3), "small-batch mismatch"

    # bf16 compute path (the v6e/v7x recommendation; still runs on v5e but f32
    # is the preferred dtype there).
    out_bf16 = jax.block_until_ready(
        mlp_forward(x, params, compute_dtype=jnp.bfloat16))
    assert out_bf16.shape == (N, 2)
    assert jnp.allclose(out_bf16, ref, atol=1e-1, rtol=1e-1), "bf16 mismatch vs reference"

    print("KERNEL_OK")
</pallas_src>

<mosaic_0001>
module attributes {stable_mosaic.version = 11 : i64} {
  func.func @mlp_kernel(%arg0: i32, %arg1: memref<3x512xf32, #tpu.memory_space<vmem>>, %arg2: memref<32x3xf32, #tpu.memory_space<vmem>>, %arg3: memref<32x1xf32, #tpu.memory_space<vmem>>, %arg4: memref<6x32x32xf32, #tpu.memory_space<vmem>>, %arg5: memref<6x32x1xf32, #tpu.memory_space<vmem>>, %arg6: memref<2x32xf32, #tpu.memory_space<vmem>>, %arg7: memref<2x1xf32, #tpu.memory_space<vmem>>, %arg8: memref<2x512xf32, #tpu.memory_space<vmem>>) attributes {dimension_semantics = [#tpu.dimension_semantics<parallel>], iteration_bounds = array<i64: 2>, scalar_prefetch = 0 : i64, scratch_operands = 0 : i64, tpu.core_type = #tpu.core_type<tc>, window_params = [{transform_indices = @transform_0, window_bounds = array<i64: 3, 512>}, {pipeline_mode = #tpu.pipeline_mode<synchronous>, transform_indices = @transform_1, window_bounds = array<i64: 32, 3>}, {pipeline_mode = #tpu.pipeline_mode<synchronous>, transform_indices = @transform_2, window_bounds = array<i64: 32, 1>}, {pipeline_mode = #tpu.pipeline_mode<synchronous>, transform_indices = @transform_3, window_bounds = array<i64: 6, 32, 32>}, {pipeline_mode = #tpu.pipeline_mode<synchronous>, transform_indices = @transform_4, window_bounds = array<i64: 6, 32, 1>}, {pipeline_mode = #tpu.pipeline_mode<synchronous>, transform_indices = @transform_5, window_bounds = array<i64: 2, 32>}, {pipeline_mode = #tpu.pipeline_mode<synchronous>, transform_indices = @transform_6, window_bounds = array<i64: 2, 1>}, {transform_indices = @transform_7, window_bounds = array<i64: 2, 512>}]} {
    %c0 = arith.constant 0 : index
    %c0_0 = arith.constant 0 : index
    %0 = vector.load %arg1[%c0, %c0_0] : memref<3x512xf32, #tpu.memory_space<vmem>>, vector<3x512xf32>
    %c0_1 = arith.constant 0 : index
    %c0_2 = arith.constant 0 : index
    %1 = vector.load %arg2[%c0_1, %c0_2] : memref<32x3xf32, #tpu.memory_space<vmem>>, vector<32x3xf32>
    %c0_3 = arith.constant 0 : index
    %c0_4 = arith.constant 0 : index
    %2 = vector.load %arg3[%c0_3, %c0_4] : memref<32x1xf32, #tpu.memory_space<vmem>>, vector<32x1xf32>
    %3 = vector.extract_strided_slice %1 {offsets = [0, 0], sizes = [32, 1], strides = [1, 1]} : vector<32x3xf32> to vector<32x1xf32>
    %4 = vector.extract_strided_slice %0 {offsets = [0, 0], sizes = [1, 512], strides = [1, 1]} : vector<3x512xf32> to vector<1x512xf32>
    %5 = vector.broadcast %3 : vector<32x1xf32> to vector<32x512xf32>
    %6 = vector.broadcast %4 : vector<1x512xf32> to vector<32x512xf32>
    %7 = arith.mulf %5, %6 : vector<32x512xf32>
    %8 = vector.broadcast %2 : vector<32x1xf32> to vector<32x512xf32>
    %9 = arith.addf %8, %7 : vector<32x512xf32>
    %10 = vector.extract_strided_slice %1 {offsets = [0, 1], sizes = [32, 1], strides = [1, 1]} : vector<32x3xf32> to vector<32x1xf32>
    %11 = vector.extract_strided_slice %0 {offsets = [1, 0], sizes = [1, 512], strides = [1, 1]} : vector<3x512xf32> to vector<1x512xf32>
    %12 = vector.broadcast %10 : vector<32x1xf32> to vector<32x512xf32>
    %13 = vector.broadcast %11 : vector<1x512xf32> to vector<32x512xf32>
    %14 = arith.mulf %12, %13 : vector<32x512xf32>
    %15 = arith.addf %9, %14 : vector<32x512xf32>
    %16 = vector.extract_strided_slice %1 {offsets = [0, 2], sizes = [32, 1], strides = [1, 1]} : vector<32x3xf32> to vector<32x1xf32>
    %17 = vector.extract_strided_slice %0 {offsets = [2, 0], sizes = [1, 512], strides = [1, 1]} : vector<3x512xf32> to vector<1x512xf32>
    %18 = vector.broadcast %16 : vector<32x1xf32> to vector<32x512xf32>
    %19 = vector.broadcast %17 : vector<1x512xf32> to vector<32x512xf32>
    %20 = arith.mulf %18, %19 : vector<32x512xf32>
    %21 = arith.addf %15, %20 : vector<32x512xf32>
    %22 = math.tanh %21 : vector<32x512xf32>
    %c0_5 = arith.constant 0 : index
    %c0_6 = arith.constant 0 : index
    %c0_7 = arith.constant 0 : index
    %23 = vector.load %arg5[%c0_5, %c0_6, %c0_7] : memref<6x32x1xf32, #tpu.memory_space<vmem>>, vector<6x32x1xf32>
    %c0_8 = arith.constant 0 : index
    %c0_9 = arith.constant 0 : index
    %c0_10 = arith.constant 0 : index
    %24 = vector.load %arg4[%c0_8, %c0_9, %c0_10] : memref<6x32x32xf32, #tpu.memory_space<vmem>>, vector<1x32x32xf32>
    %25 = vector.shape_cast %24 : vector<1x32x32xf32> to vector<32x32xf32>
    %cst = arith.constant dense<0.000000e+00> : vector<32x512xf32>
    %26 = tpu.matmul %25, %22, %cst {dimension_numbers = #tpu.dot_dimension_numbers<[1], [0], [0], [1], [0, 0, 1, 1], [], []>} : vector<32x32xf32>, vector<32x512xf32>, vector<32x512xf32> -> vector<32x512xf32>
    %27 = vector.extract_strided_slice %23 {offsets = [0, 0, 0], sizes = [1, 32, 1], strides = [1, 1, 1]} : vector<6x32x1xf32> to vector<1x32x1xf32>
    %28 = vector.shape_cast %27 : vector<1x32x1xf32> to vector<32x1xf32>
    %29 = vector.broadcast %28 : vector<32x1xf32> to vector<32x512xf32>
    %30 = arith.addf %26, %29 : vector<32x512xf32>
    %31 = math.tanh %30 : vector<32x512xf32>
    %c1 = arith.constant 1 : index
    %c0_11 = arith.constant 0 : index
    %c0_12 = arith.constant 0 : index
    %32 = vector.load %arg4[%c1, %c0_11, %c0_12] : memref<6x32x32xf32, #tpu.memory_space<vmem>>, vector<1x32x32xf32>
    %33 = vector.shape_cast %32 : vector<1x32x32xf32> to vector<32x32xf32>
    %cst_13 = arith.constant dense<0.000000e+00> : vector<32x512xf32>
    %34 = tpu.matmul %33, %31, %cst_13 {dimension_numbers = #tpu.dot_dimension_numbers<[1], [0], [0], [1], [0, 0, 1, 1], [], []>} : vector<32x32xf32>, vector<32x512xf32>, vector<32x512xf32> -> vector<32x512xf32>
    %35 = vector.extract_strided_slice %23 {offsets = [1, 0, 0], sizes = [1, 32, 1], strides = [1, 1, 1]} : vector<6x32x1xf32> to vector<1x32x1xf32>
    %36 = vector.shape_cast %35 : vector<1x32x1xf32> to vector<32x1xf32>
    %37 = vector.broadcast %36 : vector<32x1xf32> to vector<32x512xf32>
    %38 = arith.addf %34, %37 : vector<32x512xf32>
    %39 = math.tanh %38 : vector<32x512xf32>
    %c2 = arith.constant 2 : index
    %c0_14 = arith.constant 0 : index
    %c0_15 = arith.constant 0 : index
    %40 = vector.load %arg4[%c2, %c0_14, %c0_15] : memref<6x32x32xf32, #tpu.memory_space<vmem>>, vector<1x32x32xf32>
    %41 = vector.shape_cast %40 : vector<1x32x32xf32> to vector<32x32xf32>
    %cst_16 = arith.constant dense<0.000000e+00> : vector<32x512xf32>
    %42 = tpu.matmul %41, %39, %cst_16 {dimension_numbers = #tpu.dot_dimension_numbers<[1], [0], [0], [1], [0, 0, 1, 1], [], []>} : vector<32x32xf32>, vector<32x512xf32>, vector<32x512xf32> -> vector<32x512xf32>
    %43 = vector.extract_strided_slice %23 {offsets = [2, 0, 0], sizes = [1, 32, 1], strides = [1, 1, 1]} : vector<6x32x1xf32> to vector<1x32x1xf32>
    %44 = vector.shape_cast %43 : vector<1x32x1xf32> to vector<32x1xf32>
    %45 = vector.broadcast %44 : vector<32x1xf32> to vector<32x512xf32>
    %46 = arith.addf %42, %45 : vector<32x512xf32>
    %47 = math.tanh %46 : vector<32x512xf32>
    %c3 = arith.constant 3 : index
    %c0_17 = arith.constant 0 : index
    %c0_18 = arith.constant 0 : index
    %48 = vector.load %arg4[%c3, %c0_17, %c0_18] : memref<6x32x32xf32, #tpu.memory_space<vmem>>, vector<1x32x32xf32>
    %49 = vector.shape_cast %48 : vector<1x32x32xf32> to vector<32x32xf32>
    %cst_19 = arith.constant dense<0.000000e+00> : vector<32x512xf32>
    %50 = tpu.matmul %49, %47, %cst_19 {dimension_numbers = #tpu.dot_dimension_numbers<[1], [0], [0], [1], [0, 0, 1, 1], [], []>} : vector<32x32xf32>, vector<32x512xf32>, vector<32x512xf32> -> vector<32x512xf32>
    %51 = vector.extract_strided_slice %23 {offsets = [3, 0, 0], sizes = [1, 32, 1], strides = [1, 1, 1]} : vector<6x32x1xf32> to vector<1x32x1xf32>
    %52 = vector.shape_cast %51 : vector<1x32x1xf32> to vector<32x1xf32>
    %53 = vector.broadcast %52 : vector<32x1xf32> to vector<32x512xf32>
    %54 = arith.addf %50, %53 : vector<32x512xf32>
    %55 = math.tanh %54 : vector<32x512xf32>
    %c4 = arith.constant 4 : index
    %c0_20 = arith.constant 0 : index
    %c0_21 = arith.constant 0 : index
    %56 = vector.load %arg4[%c4, %c0_20, %c0_21] : memref<6x32x32xf32, #tpu.memory_space<vmem>>, vector<1x32x32xf32>
    %57 = vector.shape_cast %56 : vector<1x32x32xf32> to vector<32x32xf32>
    %cst_22 = arith.constant dense<0.000000e+00> : vector<32x512xf32>
    %58 = tpu.matmul %57, %55, %cst_22 {dimension_numbers = #tpu.dot_dimension_numbers<[1], [0], [0], [1], [0, 0, 1, 1], [], []>} : vector<32x32xf32>, vector<32x512xf32>, vector<32x512xf32> -> vector<32x512xf32>
    %59 = vector.extract_strided_slice %23 {offsets = [4, 0, 0], sizes = [1, 32, 1], strides = [1, 1, 1]} : vector<6x32x1xf32> to vector<1x32x1xf32>
    %60 = vector.shape_cast %59 : vector<1x32x1xf32> to vector<32x1xf32>
    %61 = vector.broadcast %60 : vector<32x1xf32> to vector<32x512xf32>
    %62 = arith.addf %58, %61 : vector<32x512xf32>
    %63 = math.tanh %62 : vector<32x512xf32>
    %c5 = arith.constant 5 : index
    %c0_23 = arith.constant 0 : index
    %c0_24 = arith.constant 0 : index
    %64 = vector.load %arg4[%c5, %c0_23, %c0_24] : memref<6x32x32xf32, #tpu.memory_space<vmem>>, vector<1x32x32xf32>
    %65 = vector.shape_cast %64 : vector<1x32x32xf32> to vector<32x32xf32>
    %cst_25 = arith.constant dense<0.000000e+00> : vector<32x512xf32>
    %66 = tpu.matmul %65, %63, %cst_25 {dimension_numbers = #tpu.dot_dimension_numbers<[1], [0], [0], [1], [0, 0, 1, 1], [], []>} : vector<32x32xf32>, vector<32x512xf32>, vector<32x512xf32> -> vector<32x512xf32>
    %67 = vector.extract_strided_slice %23 {offsets = [5, 0, 0], sizes = [1, 32, 1], strides = [1, 1, 1]} : vector<6x32x1xf32> to vector<1x32x1xf32>
    %68 = vector.shape_cast %67 : vector<1x32x1xf32> to vector<32x1xf32>
    %69 = vector.broadcast %68 : vector<32x1xf32> to vector<32x512xf32>
    %70 = arith.addf %66, %69 : vector<32x512xf32>
    %71 = math.tanh %70 : vector<32x512xf32>
    %c0_26 = arith.constant 0 : index
    %c0_27 = arith.constant 0 : index
    %72 = vector.load %arg6[%c0_26, %c0_27] : memref<2x32xf32, #tpu.memory_space<vmem>>, vector<2x32xf32>
    %cst_28 = arith.constant dense<0.000000e+00> : vector<2x512xf32>
    %73 = tpu.matmul %72, %71, %cst_28 {dimension_numbers = #tpu.dot_dimension_numbers<[1], [0], [0], [1], [0, 0, 1, 1], [], []>} : vector<2x32xf32>, vector<32x512xf32>, vector<2x512xf32> -> vector<2x512xf32>
    %c0_29 = arith.constant 0 : index
    %c0_30 = arith.constant 0 : index
    %74 = vector.load %arg7[%c0_29, %c0_30] : memref<2x1xf32, #tpu.memory_space<vmem>>, vector<2x1xf32>
    %75 = vector.broadcast %74 : vector<2x1xf32> to vector<2x512xf32>
    %76 = arith.addf %73, %75 : vector<2x512xf32>
    %c0_31 = arith.constant 0 : index
    %c0_32 = arith.constant 0 : index
    %77 = vector.load %arg8[%c0_31, %c0_32] : memref<2x512xf32, #tpu.memory_space<vmem>>, vector<2x512xf32>
    tpu.vector_store %arg8[%c0_31, %c0_32], %76 {strides = array<i32>} : memref<2x512xf32, #tpu.memory_space<vmem>>, vector<2x512xf32>,
    return
  }
  func.func @transform_0(%arg0: i32) -> (i32, i32) {
    %c0_i32 = arith.constant 0 : i32
    %c0_i32_0 = arith.constant 0 : i32
    return %c0_i32, %arg0 : i32, i32
  }
  func.func @transform_1(%arg0: i32) -> (i32, i32) {
    %c0_i32 = arith.constant 0 : i32
    %c0_i32_0 = arith.constant 0 : i32
    %c0_i32_1 = arith.constant 0 : i32
    return %c0_i32, %c0_i32_0 : i32, i32
  }
  func.func @transform_2(%arg0: i32) -> (i32, i32) {
    %c0_i32 = arith.constant 0 : i32
    %c0_i32_0 = arith.constant 0 : i32
    %c0_i32_1 = arith.constant 0 : i32
    return %c0_i32, %c0_i32_0 : i32, i32
  }
  func.func @transform_3(%arg0: i32) -> (i32, i32, i32) {
    %c0_i32 = arith.constant 0 : i32
    %c0_i32_0 = arith.constant 0 : i32
    %c0_i32_1 = arith.constant 0 : i32
    %c0_i32_2 = arith.constant 0 : i32
    return %c0_i32, %c0_i32_0, %c0_i32_1 : i32, i32, i32
  }
  func.func @transform_4(%arg0: i32) -> (i32, i32, i32) {
    %c0_i32 = arith.constant 0 : i32
    %c0_i32_0 = arith.constant 0 : i32
    %c0_i32_1 = arith.constant 0 : i32
    %c0_i32_2 = arith.constant 0 : i32
    return %c0_i32, %c0_i32_0, %c0_i32_1 : i32, i32, i32
  }
  func.func @transform_5(%arg0: i32) -> (i32, i32) {
    %c0_i32 = arith.constant 0 : i32
    %c0_i32_0 = arith.constant 0 : i32
    %c0_i32_1 = arith.constant 0 : i32
    return %c0_i32, %c0_i32_0 : i32, i32
  }
  func.func @transform_6(%arg0: i32) -> (i32, i32) {
    %c0_i32 = arith.constant 0 : i32
    %c0_i32_0 = arith.constant 0 : i32
    %c0_i32_1 = arith.constant 0 : i32
    return %c0_i32, %c0_i32_0 : i32, i32
  }
  func.func @transform_7(%arg0: i32) -> (i32, i32) {
    %c0_i32 = arith.constant 0 : i32
    %c0_i32_0 = arith.constant 0 : i32
    return %c0_i32, %arg0 : i32, i32
  }
}

</mosaic_0001>

<bundles_post_ra>
// kernel: tpu_custom_call.1
= control target key start
LH: loop header
LB: loop body
LE: loop exit
PB: predicated region body
PF: predicated region fallthrough
CT: control target
= control target key end

     0   :  { %12 = vsyncpa [#allocation3], 0  ;;  %s3306_s0 = inlined_call_operand.vmem [shape: f32[3,1024], index: 0, kind: input, shape index: {}]   ;;  %s3307_s1 = inlined_call_operand.vmem [shape: f32[32,3], index: 1, kind: input, shape index: {}]   ;;  %s3308_s2 = inlined_call_operand.vmem [shape: f32[32,1], index: 2, kind: input, shape index: {}]   ;;  %s3309_s3 = inlined_call_operand.vmem [shape: f32[6,32,32], index: 3, kind: input, shape index: {}]   ;;  %s3310_s4 = inlined_call_operand.vmem [shape: f32[6,32,1], index: 4, kind: input, shape index: {}]   ;;  %s3311_s5 = inlined_call_operand.vmem [shape: f32[2,32], index: 5, kind: input, shape index: {}]   ;;  %s3312_s6 = inlined_call_operand.vmem [shape: f32[2,1], index: 6, kind: input, shape index: {}]   ;;  %s3313_s7 = inlined_call_operand.hbm [shape: f32[2,1024], index: 7, kind: output, shape index: {}]  }
   0x1   :  { %14 = vsyncpa [#allocation3 + $0x1], 0  ;;  %s2828_s24 = smov 0   ;;  %s2830_s25 = smov 0  }
   0x2   :  { %s2832_s26 = smov 0   ;;  %s2834_s27 = smov 0  }
   0x3 LB: > { %s2849_s28 = sadd.s32 4294967295, %s2780_s27   ;;  %s2243_s29 = sadd.s32 4294967294, %s2780_s27   ;;  %s2780_s27 = sphi %s2834_s27, %s3319_s27   ;;  %s2776_s26 = sphi %s2832_s26, %s3318_s26   ;;  %s2772_s25 = sphi %s2830_s25, %s3317_s25   ;;  %s2768_s24 = sphi %s2828_s24, %s3316_s24  }
   0x4   : > { %s2853_s30 = sadd.s32 1, %s2780_s27   ;;  %s179_s8 = sadd.s32 1, %s2776_s26 }
   0x5   : > { %s176_s9 = ssub.s32 %s2780_s27, %s2853_s30  ;;  %p189_p0 = scmp.ne.s32.totalorder %s2776_s26, %s2772_s25 }
   0x6   : > { %p177_p1 = scmp.eq.s32.totalorder %s176_s9, 0  ;;  %p190_p2 = scmp.eq.s32.totalorder %s2849_s28, 1 }
   0x7   : > { %p195_p3 = scmp.ne.s32.totalorder %s2772_s25, %s2768_s24  ;;  %p196_p4 = scmp.eq.s32.totalorder %s2243_s29, 1 }
   0x8   : > { %s2864_s10 = scalar_select %p177_p1, %s2776_s26, %s179_s8  }
   0x9   : > { %p2866_p5 = por %p190_p2, %p189_p0  ;;  %p2870_p6 = por %p196_p4, %p195_p3 }
   0xa   : > { %p2246_p7 = scmp.ge.s32.totalorder %s2780_s27, 1  ;;  %p241_p8 = scmp.lt.s32.totalorder %s2780_s27, 3 }
   0xc   : > { %p242_p9 = pnand %p2246_p7, %p241_p8 }
   0xd   : > { %v286_v0 = vld [vmem:[%s3308_s2] sm:$0xff] (!%p242_p9)  ;;  %v2782_v2 = vmov (!%p242_p9), 0   ;;  %v287_v3 = vld [vmem:[%s3308_s2 + $0x8] sm:$0xff] (!%p242_p9)  ;;  %v285_v5 = vld [vmem:[%s3307_s1 + $0x18] sm:$0xff] (!%p242_p9)  ;;  %v2783_v6 = vmov (!%p242_p9), 1   ;;  %v2784_v9 = vmov (!%p242_p9), 2   ;;  %v312_v35 = vlaneseq (!%p242_p9) }
   0xe   : > { %245 = sbr.rel (%p242_p9) target bundleno = 1905 (0x771), region = 48  ;;  %v282_v1 = vld [vmem:[%s3307_s1] sm:$0xff] (!%p242_p9)  ;;  %2483 = vset.pattern.permute.xlu1 (!%p242_p9), %v2782_v2  ;;  %2482 = vset.pattern.permute.xlu0 (!%p242_p9), %v2782_v2  ;;  %v283_v4 = vld [vmem:[%s3307_s1 + $0x8] sm:$0xff] (!%p242_p9)  ;;  %v288_v7 = vld [vmem:[%s3308_s2 + $0x10] sm:$0xff] (!%p242_p9)  ;;  %v2785_v11 = vmov (!%p242_p9), 0.0   ;;  %s2248_s8 = sshll.u32 (!%p242_p9), %s2849_s28, 2 }
   0xf   : > { %366 = vperm.xlu1 (!%p242_p9), %2483, %v286_v0   ;;  %292 = vperm.xlu0 (!%p242_p9), %2482, %v282_v1   ;;  %v284_v8 = vld [vmem:[%s3307_s1 + $0x10] sm:$0xff] (!%p242_p9)  ;;  %v289_v10 = vld [vmem:[%s3308_s2 + $0x18] sm:$0xff] (!%p242_p9)  ;;  %v584_v12 = vld [vmem:[%s3310_s4] sm:$0xff] (!%p242_p9)  ;;  %p274_p10 = scmp.lt.s32.totalorder (!%p242_p9), %s2248_s8, 7  ;;  %v2975_v37 = vshrl.u32 (!%p242_p9), %v312_v35, 7  ;;  %vm632_vm0 = vcmask (!%p242_p9), 261120  }
  0x10   : > { %709 = vmatprep.mubr.f32.mxu0 (!%p242_p9), %v2785_v11  ;;  %798 = vmatprep.mubr.f32.mxu1 (!%p242_p9), %v2785_v11  ;;  %v585_v13 = vld [vmem:[%s3310_s4 + $0x8] sm:$0xff] (!%p242_p9)  ;;  %v586_v14 = vld [vmem:[%s3310_s4 + $0x10] sm:$0xff] (!%p242_p9)  ;;  %v587_v16 = vld [vmem:[%s3310_s4 + $0x18] sm:$0xff] (!%p242_p9)  ;;  %s2325_s29 = sshll.u32 (!%p242_p9), %s2849_s28, 7  ;;  %s2787_s28 = smov (!%p242_p9), [#allocation2]  }
  0x11   : > { %v589_v15 = vld [vmem:[%s3310_s4 + $0x28] sm:$0xff] (!%p242_p9)  ;;  %v591_v17 = vld [vmem:[%s3310_s4 + $0x38] sm:$0xff] (!%p242_p9)  ;;  %v588_v18 = vld [vmem:[%s3310_s4 + $0x20] sm:$0xff] (!%p242_p9)  ;;  %v314_v40 = vsub.s32 (!%p242_p9), 0, %v2975_v37  ;;  %v318_v41 = vsub.s32 (!%p242_p9), 4, %v2975_v37  ;;  %v418_v51 = vsub.s32 (!%p242_p9), 1, %v2975_v37  ;;  %s3264_s15 = scalar_lea.hbm (!%p242_p9), %s3313_s7, %s2325_s29 }
  0x12   : > { %v593_v19 = vld [vmem:[%s3310_s4 + $0x48] sm:$0xff] (!%p242_p9)  ;;  %v590_v20 = vld [vmem:[%s3310_s4 + $0x30] sm:$0xff] (!%p242_p9)  ;;  %v595_v21 = vld [vmem:[%s3310_s4 + $0x58] sm:$0xff] (!%p242_p9)  ;;  %v422_v52 = vsub.s32 (!%p242_p9), 5, %v2975_v37  ;;  %v502_v53 = vsub.s32 (!%p242_p9), 2, %v2975_v37  ;;  %v506_v54 = vsub.s32 (!%p242_p9), 6, %v2975_v37 }
  0x13   : > { %371 = vperm.xlu1 (!%p242_p9), %2483, %v287_v3   ;;  %297 = vperm.xlu0 (!%p242_p9), %2482, %v283_v4   ;;  %v592_v22 = vld [vmem:[%s3310_s4 + $0x40] sm:$0xff] (!%p242_p9)  ;;  %v597_v23 = vld [vmem:[%s3310_s4 + $0x68] sm:$0xff] (!%p242_p9)  ;;  %v594_v24 = vld [vmem:[%s3310_s4 + $0x50] sm:$0xff] (!%p242_p9)  ;;  %s2722_s18 = sshll.u32 (!%p242_p9), %s2787_s28, 4  ;;  %s2723_s18 = int_to_ptr.vmem [resolvable:$false] %s2722_s18 }
  0x14   : > { %v599_v25 = vld [vmem:[%s3310_s4 + $0x78] sm:$0xff] (!%p242_p9)  ;;  %v596_v26 = vld [vmem:[%s3310_s4 + $0x60] sm:$0xff] (!%p242_p9)  ;;  %v601_v27 = vld [vmem:[%s3310_s4 + $0x88] sm:$0xff] (!%p242_p9)  ;;  %s2724_s19 = scalar_lea.vmem (!%p242_p9), %s2723_s18, 256 }
  0x15   : > { %v598_v28 = vld [vmem:[%s3310_s4 + $0x70] sm:$0xff]  ;;  %v603_v29 = vld [vmem:[%s3310_s4 + $0x98] sm:$0xff]  ;;  %v600_v30 = vld [vmem:[%s3310_s4 + $0x80] sm:$0xff]  ;;  %s3321_s8 = smov (!%p274_p10, %s2248_s8), 7 }
  0x16   : > { %v605_v31 = vld [vmem:[%s3310_s4 + $0xa8] sm:$0xff]  ;;  %v602_v32 = vld [vmem:[%s3310_s4 + $0x90] sm:$0xff]  ;;  %v607_v33 = vld [vmem:[%s3310_s4 + $0xb8] sm:$0xff]  ;;  %s2249_s22 = sshll.u32 %s3321_s8, 2 }
  0x17   : > { %2484 = vset.pattern.permute.xlu1 %v2783_v6  ;;  %307 = vperm.xlu0 %2482, %v285_v5   ;;  %v604_v34 = vld [vmem:[%s3310_s4 + $0xa0] sm:$0xff]  ;;  %v606_v36 = vld [vmem:[%s3310_s4 + $0xb0] sm:$0xff]  ;;  %s277_s9 = scalar_lea.vmem %s3306_s0, %s2249_s22  ;;  %s270_s22 = sand.u32 1, %s2772_s25  }
  0x18   : > { %405 = vperm.xlu1 %2484, %v283_v4   ;;  %v1995_v38 = vld [vmem:[%s3312_s6] sm:$0x3]  ;;  %v281_v44 = vld [vmem:[%s277_s9 + $0x8] sm:$0x77]  ;;  %s2247_s23 = sshll.u32 %s270_s22, 3  ;;  %s2170_s16 = scalar_lea.sflag [#allocation3], %s270_s22 }
  0x19   : > { %v280_v43 = vld [vmem:[%s277_s9] sm:$0x77]  ;;  %v323_v47 = vrot.slane %v281_v44, %v314_v40  ;;  %v327_v50 = vrot.slane %v281_v44, %v318_v41  ;;  %v427_v63 = vrot.slane %v281_v44, %v418_v51  ;;  %v431_v0 = vrot.slane %v281_v44, %v422_v52  ;;  %s272_s9 = scalar_lea.vmem [#allocation2], %s2247_s23 }
  0x1a   : > { %v315_v45 = vrot.slane %v280_v43, %v314_v40  ;;  %v319_v46 = vrot.slane %v280_v43, %v318_v41  ;;  %v419_v61 = vrot.slane %v280_v43, %v418_v51  ;;  %v423_v62 = vrot.slane %v280_v43, %v422_v52  ;;  %s2184_s13 = sshll.u32 %s272_s9, 4  ;;  %s3266_s13 = int_to_ptr.vmem [resolvable:$true] %s2184_s13 }
  0x1b   : > { %376 = vperm.xlu0 %2482, %v288_v7   ;;  %v2995_v57 = vrot.slane %v323_v47, %v314_v40  ;;  %v2999_v59 = vrot.slane %v327_v50, %v314_v40  ;;  %v511_v3 = vrot.slane %v281_v44, %v502_v53  ;;  %s2718_s17 = scalar_lea.vmem %s3266_s13, 128  ;;  %p2725_p0 = scmp.lt.s32.totalorder %s3266_s13, %s2723_s18 }
  0x1c   : > { %2485 = vset.pattern.permute.xlu1 %v2782_v2  ;;  %v2991_v55 = vrot.slane %v315_v45, %v314_v40  ;;  %v2993_v56 = vrot.slane %v319_v46, %v314_v40  ;;  %p2719_p11 = scmp.ne.s32.totalorder %s3266_s13, %s2718_s17  ;;  %p2726_p1 = scmp.lt.s32.totalorder %s2724_s19, %s2718_s17 }
  0x1d   : > { %302 = vperm.xlu1 %2485, %v284_v8  }
  0x1e   : > { %p2720_p12 = pnand %p2719_p11, %p2866_p5  ;;  %p2727_p2 = por %p2726_p1, %p2725_p0 }
  0x1f   : > { %2487 = vset.pattern.permute.xlu0 %v2783_v6 }
  0x20   : > { %401 = vperm.xlu0 %2487, %v282_v1   ;;  %p2721_p13 = pneg %p2720_p12 }
  0x21   : > { %2486 = vset.pattern.permute.xlu1 %v2784_v9 }
  0x22   : > { %485 = vperm.xlu1 %2486, %v282_v1   ;;  %v503_v1 = vrot.slane %v280_v43, %v502_v53  ;;  %p2728_p3 = pnand %p2727_p2, %p2721_p13 }
  0x24   : > { %409 = vperm.xlu0 %2487, %v284_v8  }
  0x26   : > { %489 = vperm.xlu1 %2486, %v283_v4  }
  0x28   : > { %2491 = vset.pattern.permute.xlu0 %v2784_v9 }
  0x29   : > { %497 = vperm.xlu0 %2491, %v285_v5  }
  0x2a   : > { %2488 = vset.pattern.permute.xlu1 %v2782_v2 }
  0x2b   : > { %381 = vperm.xlu1 %2488, %v289_v10   ;;  %v3007_v10 = vrot.slane %v419_v61, %v418_v51 }
  0x2d   : > { %2493 = vset.pattern.permute.xlu0 %v2782_v2 }
  0x2e   : > { %624 = vperm.xlu0 %2493, %v586_v14  }
  0x2f   : > { %2489 = vset.pattern.permute.xlu1 %v2783_v6 }
  0x30   : > { %413 = vperm.xlu1 %2489, %v285_v5  }
  0x32   : > { %851 = vperm.xlu0 %2493, %v589_v15   ;;  %v3015_v15 = vrot.slane %v431_v0, %v418_v51 }
  0x34   : > { %2490 = vset.pattern.permute.xlu1 %v2784_v9 }
  0x35   : > { %493 = vperm.xlu1 %2490, %v284_v8   ;;  %v515_v8 = vrot.slane %v281_v44, %v506_v54 }
  0x36   : > { %861 = vperm.xlu0 %2493, %v591_v17  }
  0x39   : > { %2492 = vset.pattern.permute.xlu1 %v2782_v2  ;;  %v507_v2 = vrot.slane %v280_v43, %v506_v54 }
  0x3a   : > { %614 = vperm.xlu1 %2492, %v584_v12   ;;  %1082 = vperm.xlu0 %2493, %v593_v19   ;;  %v3009_v12 = vrot.slane %v423_v62, %v418_v51 }
  0x3b   : > { %v3019_v17 = vrot.slane %v507_v2, %v502_v53 }
  0x3e   : > { %619 = vperm.xlu1 %2492, %v585_v13   ;;  %1092 = vperm.xlu0 %2493, %v595_v21   ;;  %v3011_v13 = vrot.slane %v427_v63, %v418_v51 }
  0x42   : > { %629 = vperm.xlu1 %2492, %v587_v16   ;;  %1313 = vperm.xlu0 %2493, %v597_v23   ;;  %v3017_v16 = vrot.slane %v503_v1, %v502_v53 }
  0x46   : > { %846 = vperm.xlu1 %2492, %v588_v18   ;;  %1323 = vperm.xlu0 %2493, %v599_v25   ;;  %v3021_v18 = vrot.slane %v511_v3, %v502_v53 }
  0x4a   : > { %856 = vperm.xlu1 %2492, %v590_v20   ;;  %1544 = vperm.xlu0 %2493, %v601_v27  }
  0x4e   : > { %1077 = vperm.xlu1 %2492, %v592_v22   ;;  %1554 = vperm.xlu0 %2493, %v603_v29   ;;  %v3023_v22 = vrot.slane %v515_v8, %v502_v53 }
  0x52   : > { %1087 = vperm.xlu1 %2492, %v594_v24   ;;  %1775 = vperm.xlu0 %2493, %v605_v31  }
  0x56   : > { %1308 = vperm.xlu1 %2492, %v596_v26   ;;  %1785 = vperm.xlu0 %2493, %v607_v33  }
  0x5a   : > { %1318 = vperm.xlu1 %2492, %v598_v28  }
  0x5e   : > { %1539 = vperm.xlu1 %2492, %v600_v30  }
  0x62   : > { %1549 = vperm.xlu1 %2492, %v602_v32  }
  0x66   : > { %1770 = vperm.xlu1 %2492, %v604_v34  }
  0x6a   : > { %1780 = vperm.xlu1 %2492, %v606_v36  }
  0x6e   : > { %1998 = vperm.xlu1 %2492, %v1995_v38  }
  0x8e   : > { %v367_v39 = vpop.permute.xlu1 %366  ;;  %v293_v42 = vpop.permute.xlu0 %292 }
  0x8f   : > { %v348_v4 = vmul.f32 %v2991_v55, %v293_v42  ;;  %v349_v5 = vmul.f32 %v2993_v56, %v293_v42  ;;  %v350_v6 = vmul.f32 %v2995_v57, %v293_v42  ;;  %v351_v9 = vmul.f32 %v2999_v59, %v293_v42 }
  0x91   : > { %v384_v19 = vadd.f32 %v367_v39, %v348_v4  ;;  %v385_v20 = vadd.f32 %v367_v39, %v349_v5  ;;  %v386_v21 = vadd.f32 %v367_v39, %v350_v6  ;;  %v387_v23 = vadd.f32 %v367_v39, %v351_v9 }
  0x92   : > { %v2985_v48 = vpop.permute.xlu1 %371  ;;  %v298_v49 = vpop.permute.xlu0 %297 }
  0x93   : > { %v352_v24 = vmul.f32 %v2991_v55, %v298_v49  ;;  %v353_v25 = vmul.f32 %v2993_v56, %v298_v49  ;;  %v354_v26 = vmul.f32 %v2995_v57, %v298_v49  ;;  %v355_v32 = vmul.f32 %v2999_v59, %v298_v49 }
  0x95   : > { %v388_v46 = vadd.f32 %v2985_v48, %v352_v24  ;;  %v389_v47 = vadd.f32 %v2985_v48, %v353_v25  ;;  %v390_v49 = vadd.f32 %v2985_v48, %v354_v26  ;;  %v391_v51 = vadd.f32 %v2985_v48, %v355_v32 }
  0x96   : > { %v2997_v58 = vpop.permute.xlu0 %307 }
  0x97   : > { %v406_v60 = vpop.permute.xlu1 %405  ;;  %v362_v25 = vmul.f32 %v2995_v57, %v2997_v58  ;;  %v363_v26 = vmul.f32 %v2999_v59, %v2997_v58 }
  0x98   : > { %v456_v33 = vmul.f32 %v3007_v10, %v406_v60  ;;  %v457_v34 = vmul.f32 %v3009_v12, %v406_v60  ;;  %v458_v35 = vmul.f32 %v3011_v13, %v406_v60  ;;  %v459_v50 = vmul.f32 %v3015_v15, %v406_v60 }
  0x9a   : > { %v3004_v7 = vpop.permute.xlu0 %376  ;;  %v472_v62 = vadd.f32 %v456_v33, %v388_v46  ;;  %v473_v63 = vadd.f32 %v457_v34, %v389_v47  ;;  %v474_v0 = vadd.f32 %v458_v35, %v390_v49  ;;  %v475_v6 = vadd.f32 %v459_v50, %v391_v51 }
  0x9c   : > { %v3013_v14 = vpop.permute.xlu1 %302 }
  0x9f   : > { %v402_v27 = vpop.permute.xlu0 %401 }
  0xa0   : > { %v452_v28 = vmul.f32 %v3007_v10, %v402_v27  ;;  %v453_v29 = vmul.f32 %v3009_v12, %v402_v27  ;;  %v454_v30 = vmul.f32 %v3011_v13, %v402_v27  ;;  %v455_v31 = vmul.f32 %v3015_v15, %v402_v27 }
  0xa1   : > { %v486_v36 = vpop.permute.xlu1 %485  ;;  %v356_v27 = vmul.f32 %v2991_v55, %v3013_v14 }
  0xa2   : > { %v468_v38 = vadd.f32 %v452_v28, %v384_v19  ;;  %v469_v39 = vadd.f32 %v453_v29, %v385_v20  ;;  %v470_v40 = vadd.f32 %v454_v30, %v386_v21  ;;  %v471_v41 = vadd.f32 %v455_v31, %v387_v23 }
  0xa3   : > { %v536_v42 = vmul.f32 %v3017_v16, %v486_v36  ;;  %v537_v43 = vmul.f32 %v3019_v17, %v486_v36  ;;  %v538_v44 = vmul.f32 %v3021_v18, %v486_v36  ;;  %v539_v45 = vmul.f32 %v3023_v22, %v486_v36  ;;  %v410_v2 = vpop.permute.xlu0 %409 }
  0xa4   : > { %v360_v19 = vmul.f32 %v2991_v55, %v2997_v58  ;;  %v361_v20 = vmul.f32 %v2993_v56, %v2997_v58  ;;  %v357_v28 = vmul.f32 %v2993_v56, %v3013_v14  ;;  %v358_v29 = vmul.f32 %v2995_v57, %v3013_v14 }
  0xa5   : > { %v552_v52 = vadd.f32 %v536_v42, %v468_v38  ;;  %v553_v53 = vadd.f32 %v537_v43, %v469_v39  ;;  %v554_v54 = vadd.f32 %v538_v44, %v470_v40  ;;  %v490_v61 = vpop.permute.xlu1 %489  ;;  %v555_v1 = vadd.f32 %v539_v45, %v471_v41 }
  0xa6   : > { %v540_v3 = vmul.f32 %v3017_v16, %v490_v61  ;;  %v541_v4 = vmul.f32 %v3019_v17, %v490_v61  ;;  %v542_v5 = vmul.f32 %v3021_v18, %v490_v61  ;;  %v543_v48 = vmul.f32 %v3023_v22, %v490_v61 }
  0xa7   : > { %2494 = vtanh.f32 %v552_v52  ;;  %v359_v30 = vmul.f32 %v2999_v59, %v3013_v14  ;;  %v460_v31 = vmul.f32 %v3007_v10, %v410_v2  ;;  %v461_v32 = vmul.f32 %v3009_v12, %v410_v2 }
  0xa8   : > { %2496 = vtanh.f32 %v553_v53  ;;  %v556_v60 = vadd.f32 %v540_v3, %v472_v62  ;;  %v557_v8 = vadd.f32 %v541_v4, %v473_v63  ;;  %v558_v9 = vadd.f32 %v542_v5, %v474_v0  ;;  %v498_v24 = vpop.permute.xlu0 %497 }
  0xa9   : > { %2498 = vtanh.f32 %v554_v54  ;;  %v559_v21 = vadd.f32 %v543_v48, %v475_v6  ;;  %v548_v58 = vmul.f32 %v3017_v16, %v498_v24  ;;  %v549_v34 = vmul.f32 %v3019_v17, %v498_v24 }
  0xaa   : > { %2500 = vtanh.f32 %v555_v1  ;;  %v382_v23 = vpop.permute.xlu1 %381  ;;  %v550_v57 = vmul.f32 %v3021_v18, %v498_v24  ;;  %v551_v59 = vmul.f32 %v3023_v22, %v498_v24  ;;  %v392_v42 = vadd.f32 %v3004_v7, %v356_v27 }
  0xab   : > { %2502 = vtanh.f32 %v556_v60  ;;  %v396_v55 = vadd.f32 %v382_v23, %v360_v19  ;;  %v397_v33 = vadd.f32 %v382_v23, %v361_v20  ;;  %v398_v56 = vadd.f32 %v382_v23, %v362_v25 }
  0xac   : > { %2504 = vtanh.f32 %v557_v8  ;;  %v399_v35 = vadd.f32 %v382_v23, %v363_v26  ;;  %v393_v43 = vadd.f32 %v3004_v7, %v357_v28  ;;  %v462_v44 = vmul.f32 %v3011_v13, %v410_v2 }
  0xad   : > { %2506 = vtanh.f32 %v558_v9  ;;  %v463_v45 = vmul.f32 %v3015_v15, %v410_v2  ;;  %v395_v52 = vadd.f32 %v3004_v7, %v359_v30  ;;  %v476_v53 = vadd.f32 %v460_v31, %v392_v42 }
  0xae   : > { %2508 = vtanh.f32 %v559_v21  ;;  %v477_v54 = vadd.f32 %v461_v32, %v393_v43 }
  0xaf   : > { %v414_v36 = vpop.permute.xlu1 %413 }
  0xb0   : > { %v464_v14 = vmul.f32 %v3007_v10, %v414_v36  ;;  %v465_v38 = vmul.f32 %v3009_v12, %v414_v36  ;;  %v466_v39 = vmul.f32 %v3011_v13, %v414_v36  ;;  %v467_v40 = vmul.f32 %v3015_v15, %v414_v36 }
  0xb1   : > { %v2495_v41 = vpop.eup %2494  ;;  %v394_v12 = vadd.f32 %v3004_v7, %v358_v29  ;;  %v479_v7 = vadd.f32 %v463_v45, %v395_v52 }
  0xb2   : > { %v2497_v46 = vpop.eup %2496  ;;  %v480_v47 = vadd.f32 %v464_v14, %v396_v55  ;;  %v481_v49 = vadd.f32 %v465_v38, %v397_v33  ;;  %v482_v50 = vadd.f32 %v466_v39, %v398_v56  ;;  %v483_v10 = vadd.f32 %v467_v40, %v399_v35  ;;  %v608_v33 = vld [vmem:[%s3309_s3] sm:$0xff]  ;;  %v610_v56 = vld [vmem:[%s3309_s3 + $0x10] sm:$0xff]  ;;  %v611_v35 = vld [vmem:[%s3309_s3 + $0x18] sm:$0xff] }
  0xb3   : > { %v2499_v51 = vpop.eup %2498  ;;  %v478_v48 = vadd.f32 %v462_v44, %v394_v12 }
  0xb4   : > { %v2501_v61 = vpop.eup %2500  ;;  %v564_v62 = vadd.f32 %v548_v58, %v480_v47  ;;  %v565_v63 = vadd.f32 %v549_v34, %v481_v49  ;;  %v566_v0 = vadd.f32 %v550_v57, %v482_v50  ;;  %v567_v1 = vadd.f32 %v551_v59, %v483_v10  ;;  %v494_v13 = vpop.permute.xlu1 %493  ;;  %v609_v34 = vld [vmem:[%s3309_s3 + $0x8] sm:$0xff] }
  0xb5   : > { %v2503_v3 = vpop.eup %2502  ;;  %v544_v15 = vmul.f32 %v3017_v16, %v494_v13  ;;  %v545_v2 = vmul.f32 %v3019_v17, %v494_v13  ;;  %v546_v4 = vmul.f32 %v3021_v18, %v494_v13  ;;  %v547_v5 = vmul.f32 %v3023_v22, %v494_v13 }
  0xb6   : > { %v2505_v6 = vpop.eup %2504  ;;  %2510 = vtanh.f32 %v564_v62  ;;  %v2328_v19 = vpack.c.bf16 %v2503_v3, %v2495_v41 }
  0xb7   : > { %v2507_v60 = vpop.eup %2506  ;;  %2512 = vtanh.f32 %v565_v63  ;;  %v560_v8 = vadd.f32 %v544_v15, %v476_v53  ;;  %v561_v9 = vadd.f32 %v545_v2, %v477_v54  ;;  %v562_v21 = vadd.f32 %v546_v4, %v478_v48 }
  0xb8   : > { %v2509_v20 = vpop.eup %2508  ;;  %2514 = vtanh.f32 %v566_v0  ;;  %v2326_v23 = vpack.c.bf16 %v2505_v6, %v2497_v46  ;;  %v2336_v16 = vpack.c.bf16 %v2507_v60, %v2499_v51  ;;  %v563_v17 = vadd.f32 %v547_v5, %v479_v7  ;;  %v625_v51 = vpop.permute.xlu0 %624 }
  0xb9   : > { %2516 = vtanh.f32 %v567_v1  ;;  %v2334_v24 = vpack.c.bf16 %v2509_v20, %v2501_v61  ;;  %v615_v36 = vpop.permute.xlu1 %614 }
  0xba   : > { %2518 = vtanh.f32 %v560_v8  ;;  %2327 = vmatprep.subr.bf16.mxu0 %v2326_v23 }
  0xbb   : > { %2520 = vtanh.f32 %v561_v9  ;;  %2335 = vmatprep.subr.bf16.mxu1 %v2334_v24  ;;  %2329 = vmatpush1.bf16.msra.mxu0 %v2328_v19 }
  0xbc   : > { %2522 = vtanh.f32 %v562_v21  ;;  %2337 = vmatpush1.bf16.msra.mxu1 %v2336_v16 }
  0xbd   : > { %2524 = vtanh.f32 %v563_v17  ;;  %v620_v42 = vpop.permute.xlu1 %619 }
  0xc0   : > { %v2511_v18 = vpop.eup %2510 }
  0xc1   : > { %v2513_v22 = vpop.eup %2512  ;;  %v630_v1 = vpop.permute.xlu1 %629 }
  0xc2   : > { %v2515_v25 = vpop.eup %2514 }
  0xc3   : > { %v2517_v26 = vpop.eup %2516 }
  0xc4   : > { %v2519_v27 = vpop.eup %2518 }
  0xc5   : > { %v2521_v28 = vpop.eup %2520  ;;  %v2332_v29 = vpack.c.bf16 %v2511_v18, %v2519_v27 }
  0xc6   : > { %v2523_v30 = vpop.eup %2522  ;;  %v2330_v31 = vpack.c.bf16 %v2513_v22, %v2521_v28 }
  0xc7   : > { %v2525_v32 = vpop.eup %2524  ;;  %v2340_v58 = vpack.c.bf16 %v2515_v25, %v2523_v30 }
  0xc8   : > { %2331 = vmatprep.subr.bf16.mxu0 %v2330_v31  ;;  %v2338_v55 = vpack.c.bf16 %v2517_v26, %v2525_v32 }
  0xc9   : > { %2333 = vmatpush1.bf16.msra.mxu0 %v2332_v29 }
  0xca   : > { %2339 = vmatprep.subr.bf16.mxu1 %v2338_v55 }
  0xcb   : > { %2341 = vmatpush1.bf16.msra.mxu1 %v2340_v58 }
  0xcc   : > { %2250 = vmatmul.mubr.msk.f32.vlgmr.msra.gmra.mrb[0].mxu0 %vm632_vm0, %v608_v33 }
  0xcd   : > { %715 = vmatprep.mubr.f32.mxu0 %v2785_v11 }
  0xce   : > { %2254 = vmatmul.mubr.msk.f32.vlgmr.msra.gmra.mrb[0].mxu1 %vm632_vm0, %v608_v33 }
  0xcf   : > { %804 = vmatprep.mubr.f32.mxu1 %v2785_v11 }
  0xd0   : > { %2251 = vmatmul.mubr.msk.f32.gmra.mrb[2].mxu0 %vm632_vm0, %v609_v34 }
  0xd1   : > { %721 = vmatprep.mubr.f32.mxu0 %v2785_v11 }
  0xd2   : > { %2255 = vmatmul.mubr.msk.f32.gmra.mrb[2].mxu1 %vm632_vm0, %v609_v34 }
  0xd3   : > { %810 = vmatprep.mubr.f32.mxu1 %v2785_v11 }
  0xd4   : > { %2252 = vmatmul.mubr.msk.f32.gmra.mrb[4].mxu0 %vm632_vm0, %v610_v56 }
  0xd5   : > { %727 = vmatprep.mubr.f32.mxu0 %v2785_v11 }
  0xd6   : > { %2256 = vmatmul.mubr.msk.f32.gmra.mrb[4].mxu1 %vm632_vm0, %v610_v56  ;;  %v2258_v56 = vld [vmem:[%s3309_s3 + $0x20] sm:$0xff] }
  0xd7   : > { %816 = vmatprep.mubr.f32.mxu1 %v2785_v11 }
  0xd8   : > { %2253 = vmatmul.mubr.msk.f32.gmra.mrb[6].mxu0 %vm632_vm0, %v611_v35 }
  0xd9   : > { %940 = vmatprep.mubr.f32.mxu0 %v2785_v11 }
  0xda   : > { %2257 = vmatmul.mubr.msk.f32.gmra.mrb[6].mxu1 %vm632_vm0, %v611_v35  ;;  %v2259_v35 = vld [vmem:[%s3309_s3 + $0x28] sm:$0xff] }
  0xdb   : > { %1029 = vmatprep.mubr.f32.mxu1 %v2785_v11 }
 0x19f   : > { %v711_v57 = vpop.f32.mrb[0].mxu0 }
 0x1a0   : > { %v712_v59 = vadd.f32 %v711_v57, %v615_v36  ;;  %v713_v14 = vpop.f32.mrb[1].mxu0  ;;  %v2261_v57 = vld [vmem:[%s3309_s3 + $0x38] sm:$0xff] }
 0x1a1   : > { %v800_v38 = vpop.f32.mrb[0].mxu1  ;;  %v714_v39 = vadd.f32 %v713_v14, %v615_v36 }
 0x1a2   : > { %2526 = vtanh.f32 %v712_v59  ;;  %v801_v40 = vadd.f32 %v800_v38, %v615_v36  ;;  %v802_v41 = vpop.f32.mrb[1].mxu1  ;;  %v847_v59 = vpop.permute.xlu1 %846 }
 0x1a3   : > { %2528 = vtanh.f32 %v714_v39  ;;  %v803_v43 = vadd.f32 %v802_v41, %v615_v36  ;;  %v717_v44 = vpop.f32.mrb[2].mxu0  ;;  %v2260_v36 = vld [vmem:[%s3309_s3 + $0x30] sm:$0xff] }
 0x1a4   : > { %2530 = vtanh.f32 %v801_v40  ;;  %v718_v45 = vadd.f32 %v717_v44, %v620_v42  ;;  %v719_v46 = vpop.f32.mrb[3].mxu0  ;;  %v852_v44 = vpop.permute.xlu0 %851 }
 0x1a5   : > { %2532 = vtanh.f32 %v803_v43  ;;  %v806_v47 = vpop.f32.mrb[2].mxu1  ;;  %v720_v49 = vadd.f32 %v719_v46, %v620_v42 }
 0x1a6   : > { %2534 = vtanh.f32 %v718_v45  ;;  %v807_v50 = vadd.f32 %v806_v47, %v620_v42  ;;  %v808_v10 = vpop.f32.mrb[3].mxu1 }
 0x1a7   : > { %2536 = vtanh.f32 %v720_v49  ;;  %v809_v12 = vadd.f32 %v808_v10, %v620_v42  ;;  %v723_v52 = vpop.f32.mrb[4].mxu0 }
 0x1a8   : > { %2538 = vtanh.f32 %v807_v50  ;;  %v724_v53 = vadd.f32 %v723_v52, %v625_v51  ;;  %v725_v54 = vpop.f32.mrb[5].mxu0  ;;  %v857_v52 = vpop.permute.xlu1 %856 }
 0x1a9   : > { %2540 = vtanh.f32 %v809_v12  ;;  %v812_v61 = vpop.f32.mrb[4].mxu1  ;;  %v726_v62 = vadd.f32 %v725_v54, %v625_v51 }
 0x1aa   : > { %2542 = vtanh.f32 %v724_v53  ;;  %v813_v63 = vadd.f32 %v812_v61, %v625_v51  ;;  %v814_v0 = vpop.f32.mrb[5].mxu1 }
 0x1ab   : > { %2544 = vtanh.f32 %v726_v62  ;;  %v815_v13 = vadd.f32 %v814_v0, %v625_v51  ;;  %v729_v3 = vpop.f32.mrb[6].mxu0 }
 0x1ac   : > { %v2527_v15 = vpop.eup %2526  ;;  %2546 = vtanh.f32 %v813_v63  ;;  %v730_v2 = vadd.f32 %v729_v3, %v630_v1  ;;  %v731_v4 = vpop.f32.mrb[7].mxu0 }
 0x1ad   : > { %v2529_v5 = vpop.eup %2528  ;;  %2548 = vtanh.f32 %v815_v13  ;;  %v818_v6 = vpop.f32.mrb[6].mxu1  ;;  %v732_v48 = vadd.f32 %v731_v4, %v630_v1 }
 0x1ae   : > { %v2531_v7 = vpop.eup %2530  ;;  %2550 = vtanh.f32 %v730_v2  ;;  %v819_v60 = vadd.f32 %v818_v6, %v630_v1  ;;  %v820_v8 = vpop.f32.mrb[7].mxu1 }
 0x1af   : > { %v2533_v9 = vpop.eup %2532  ;;  %2552 = vtanh.f32 %v732_v48  ;;  %v821_v19 = vadd.f32 %v820_v8, %v630_v1  ;;  %v862_v3 = vpop.permute.xlu0 %861 }
 0x1b0   : > { %v2535_v20 = vpop.eup %2534  ;;  %2554 = vtanh.f32 %v819_v60 }
 0x1b1   : > { %v2537_v21 = vpop.eup %2536  ;;  %2556 = vtanh.f32 %v821_v19  ;;  %v2344_v23 = vpack.c.bf16 %v2535_v20, %v2527_v15 }
 0x1b2   : > { %v2539_v16 = vpop.eup %2538  ;;  %v2342_v17 = vpack.c.bf16 %v2537_v21, %v2529_v5 }
 0x1b3   : > { %v2541_v24 = vpop.eup %2540  ;;  %v2352_v18 = vpack.c.bf16 %v2539_v16, %v2531_v7 }
 0x1b4   : > { %v2543_v22 = vpop.eup %2542  ;;  %2343 = vmatprep.subr.bf16.mxu0 %v2342_v17  ;;  %v2350_v25 = vpack.c.bf16 %v2541_v24, %v2533_v9 }
 0x1b5   : > { %v2545_v26 = vpop.eup %2544  ;;  %2345 = vmatpush1.bf16.msra.mxu0 %v2344_v23 }
 0x1b6   : > { %v2547_v27 = vpop.eup %2546  ;;  %2351 = vmatprep.subr.bf16.mxu1 %v2350_v25 }
 0x1b7   : > { %v2549_v28 = vpop.eup %2548  ;;  %2353 = vmatpush1.bf16.msra.mxu1 %v2352_v18 }
 0x1b8   : > { %v2551_v29 = vpop.eup %2550 }
 0x1b9   : > { %v2553_v30 = vpop.eup %2552  ;;  %v2348_v31 = vpack.c.bf16 %v2551_v29, %v2543_v22 }
 0x1ba   : > { %v2555_v32 = vpop.eup %2554  ;;  %v2346_v58 = vpack.c.bf16 %v2553_v30, %v2545_v26 }
 0x1bb   : > { %v2557_v55 = vpop.eup %2556  ;;  %v2356_v33 = vpack.c.bf16 %v2555_v32, %v2547_v27 }
 0x1bc   : > { %2347 = vmatprep.subr.bf16.mxu0 %v2346_v58  ;;  %v2354_v34 = vpack.c.bf16 %v2557_v55, %v2549_v28 }
 0x1bd   : > { %2349 = vmatpush1.bf16.msra.mxu0 %v2348_v31 }
 0x1be   : > { %2355 = vmatprep.subr.bf16.mxu1 %v2354_v34 }
 0x1bf   : > { %2357 = vmatpush1.bf16.msra.mxu1 %v2356_v33 }
 0x1c0   : > { %2262 = vmatmul.mubr.msk.f32.vlgmr.msra.gmra.mrb[8].mxu0 %vm632_vm0, %v2258_v56 }
 0x1c1   : > { %946 = vmatprep.mubr.f32.mxu0 %v2785_v11 }
 0x1c2   : > { %2266 = vmatmul.mubr.msk.f32.vlgmr.msra.gmra.mrb[8].mxu1 %vm632_vm0, %v2258_v56 }
 0x1c3   : > { %1035 = vmatprep.mubr.f32.mxu1 %v2785_v11 }
 0x1c4   : > { %2263 = vmatmul.mubr.msk.f32.gmra.mrb[10].mxu0 %vm632_vm0, %v2259_v35 }
 0x1c5   : > { %952 = vmatprep.mubr.f32.mxu0 %v2785_v11 }
 0x1c6   : > { %2267 = vmatmul.mubr.msk.f32.gmra.mrb[10].mxu1 %vm632_vm0, %v2259_v35 }
 0x1c7   : > { %1041 = vmatprep.mubr.f32.mxu1 %v2785_v11 }
 0x1c8   : > { %2264 = vmatmul.mubr.msk.f32.gmra.mrb[12].mxu0 %vm632_vm0, %v2260_v36 }
 0x1c9   : > { %958 = vmatprep.mubr.f32.mxu0 %v2785_v11 }
 0x1ca   : > { %2268 = vmatmul.mubr.msk.f32.gmra.mrb[12].mxu1 %vm632_vm0, %v2260_v36  ;;  %v2270_v36 = vld [vmem:[%s3309_s3 + $0x40] sm:$0xff] }
 0x1cb   : > { %1047 = vmatprep.mubr.f32.mxu1 %v2785_v11 }
 0x1cc   : > { %2265 = vmatmul.mubr.msk.f32.gmra.mrb[14].mxu0 %vm632_vm0, %v2261_v57 }
 0x1cd   : > { %1171 = vmatprep.mubr.f32.mxu0 %v2785_v11 }
 0x1ce   : > { %2269 = vmatmul.mubr.msk.f32.gmra.mrb[14].mxu1 %vm632_vm0, %v2261_v57  ;;  %v2271_v57 = vld [vmem:[%s3309_s3 + $0x48] sm:$0xff] }
 0x1cf   : > { %1260 = vmatprep.mubr.f32.mxu1 %v2785_v11 }
 0x293   : > { %v942_v14 = vpop.f32.mrb[8].mxu0 }
 0x294   : > { %v943_v38 = vadd.f32 %v942_v14, %v847_v59  ;;  %v944_v39 = vpop.f32.mrb[9].mxu0  ;;  %v2273_v14 = vld [vmem:[%s3309_s3 + $0x58] sm:$0xff] }
 0x295   : > { %v1031_v40 = vpop.f32.mrb[8].mxu1  ;;  %v945_v41 = vadd.f32 %v944_v39, %v847_v59 }
 0x296   : > { %2558 = vtanh.f32 %v943_v38  ;;  %v1032_v42 = vadd.f32 %v1031_v40, %v847_v59  ;;  %v1033_v43 = vpop.f32.mrb[9].mxu1  ;;  %v1078_v38 = vpop.permute.xlu1 %1077 }
 0x297   : > { %2560 = vtanh.f32 %v945_v41  ;;  %v1034_v45 = vadd.f32 %v1033_v43, %v847_v59  ;;  %v948_v46 = vpop.f32.mrb[10].mxu0  ;;  %v2272_v59 = vld [vmem:[%s3309_s3 + $0x50] sm:$0xff] }
 0x298   : > { %2562 = vtanh.f32 %v1032_v42  ;;  %v949_v47 = vadd.f32 %v948_v46, %v852_v44  ;;  %v950_v49 = vpop.f32.mrb[11].mxu0  ;;  %v1083_v46 = vpop.permute.xlu0 %1082 }
 0x299   : > { %2564 = vtanh.f32 %v1034_v45  ;;  %v1037_v50 = vpop.f32.mrb[10].mxu1  ;;  %v951_v10 = vadd.f32 %v950_v49, %v852_v44 }
 0x29a   : > { %2566 = vtanh.f32 %v949_v47  ;;  %v1038_v51 = vadd.f32 %v1037_v50, %v852_v44  ;;  %v1039_v12 = vpop.f32.mrb[11].mxu1 }
 0x29b   : > { %2568 = vtanh.f32 %v951_v10  ;;  %v1040_v53 = vadd.f32 %v1039_v12, %v852_v44  ;;  %v954_v54 = vpop.f32.mrb[12].mxu0 }
 0x29c   : > { %2570 = vtanh.f32 %v1038_v51  ;;  %v955_v61 = vadd.f32 %v954_v54, %v857_v52  ;;  %v956_v62 = vpop.f32.mrb[13].mxu0  ;;  %v1088_v54 = vpop.permute.xlu1 %1087 }
 0x29d   : > { %2572 = vtanh.f32 %v1040_v53  ;;  %v1043_v63 = vpop.f32.mrb[12].mxu1  ;;  %v957_v0 = vadd.f32 %v956_v62, %v857_v52 }
 0x29e   : > { %2574 = vtanh.f32 %v955_v61  ;;  %v1044_v1 = vadd.f32 %v1043_v63, %v857_v52  ;;  %v1045_v13 = vpop.f32.mrb[13].mxu1 }
 0x29f   : > { %2576 = vtanh.f32 %v957_v0  ;;  %v1046_v15 = vadd.f32 %v1045_v13, %v857_v52  ;;  %v960_v2 = vpop.f32.mrb[14].mxu0 }
 0x2a0   : > { %v2559_v4 = vpop.eup %2558  ;;  %2578 = vtanh.f32 %v1044_v1  ;;  %v961_v5 = vadd.f32 %v960_v2, %v862_v3  ;;  %v962_v6 = vpop.f32.mrb[15].mxu0 }
 0x2a1   : > { %v2561_v48 = vpop.eup %2560  ;;  %2580 = vtanh.f32 %v1046_v15  ;;  %v1049_v7 = vpop.f32.mrb[14].mxu1  ;;  %v963_v60 = vadd.f32 %v962_v6, %v862_v3 }
 0x2a2   : > { %v2563_v8 = vpop.eup %2562  ;;  %2582 = vtanh.f32 %v961_v5  ;;  %v1050_v9 = vadd.f32 %v1049_v7, %v862_v3  ;;  %v1051_v19 = vpop.f32.mrb[15].mxu1 }
 0x2a3   : > { %v2565_v20 = vpop.eup %2564  ;;  %2584 = vtanh.f32 %v963_v60  ;;  %v1052_v21 = vadd.f32 %v1051_v19, %v862_v3  ;;  %v1093_v2 = vpop.permute.xlu0 %1092 }
 0x2a4   : > { %v2567_v23 = vpop.eup %2566  ;;  %2586 = vtanh.f32 %v1050_v9 }
 0x2a5   : > { %v2569_v16 = vpop.eup %2568  ;;  %2588 = vtanh.f32 %v1052_v21  ;;  %v2360_v17 = vpack.c.bf16 %v2567_v23, %v2559_v4 }
 0x2a6   : > { %v2571_v24 = vpop.eup %2570  ;;  %v2358_v18 = vpack.c.bf16 %v2569_v16, %v2561_v48 }
 0x2a7   : > { %v2573_v22 = vpop.eup %2572  ;;  %v2368_v25 = vpack.c.bf16 %v2571_v24, %v2563_v8 }
 0x2a8   : > { %v2575_v26 = vpop.eup %2574  ;;  %2359 = vmatprep.subr.bf16.mxu0 %v2358_v18  ;;  %v2366_v27 = vpack.c.bf16 %v2573_v22, %v2565_v20 }
 0x2a9   : > { %v2577_v28 = vpop.eup %2576  ;;  %2361 = vmatpush1.bf16.msra.mxu0 %v2360_v17 }
 0x2aa   : > { %v2579_v29 = vpop.eup %2578  ;;  %2367 = vmatprep.subr.bf16.mxu1 %v2366_v27 }
 0x2ab   : > { %v2581_v30 = vpop.eup %2580  ;;  %2369 = vmatpush1.bf16.msra.mxu1 %v2368_v25 }
 0x2ac   : > { %v2583_v31 = vpop.eup %2582 }
 0x2ad   : > { %v2585_v32 = vpop.eup %2584  ;;  %v2364_v58 = vpack.c.bf16 %v2583_v31, %v2575_v26 }
 0x2ae   : > { %v2587_v55 = vpop.eup %2586  ;;  %v2362_v33 = vpack.c.bf16 %v2585_v32, %v2577_v28 }
 0x2af   : > { %v2589_v34 = vpop.eup %2588  ;;  %v2372_v56 = vpack.c.bf16 %v2587_v55, %v2579_v29 }
 0x2b0   : > { %2363 = vmatprep.subr.bf16.mxu0 %v2362_v33  ;;  %v2370_v35 = vpack.c.bf16 %v2589_v34, %v2581_v30 }
 0x2b1   : > { %2365 = vmatpush1.bf16.msra.mxu0 %v2364_v58 }
 0x2b2   : > { %2371 = vmatprep.subr.bf16.mxu1 %v2370_v35 }
 0x2b3   : > { %2373 = vmatpush1.bf16.msra.mxu1 %v2372_v56 }
 0x2b4   : > { %2274 = vmatmul.mubr.msk.f32.vlgmr.msra.gmra.mrb[16].mxu0 %vm632_vm0, %v2270_v36 }
 0x2b5   : > { %1177 = vmatprep.mubr.f32.mxu0 %v2785_v11 }
 0x2b6   : > { %2278 = vmatmul.mubr.msk.f32.vlgmr.msra.gmra.mrb[16].mxu1 %vm632_vm0, %v2270_v36 }
 0x2b7   : > { %1266 = vmatprep.mubr.f32.mxu1 %v2785_v11 }
 0x2b8   : > { %2275 = vmatmul.mubr.msk.f32.gmra.mrb[18].mxu0 %vm632_vm0, %v2271_v57 }
 0x2b9   : > { %1183 = vmatprep.mubr.f32.mxu0 %v2785_v11 }
 0x2ba   : > { %2279 = vmatmul.mubr.msk.f32.gmra.mrb[18].mxu1 %vm632_vm0, %v2271_v57 }
 0x2bb   : > { %1272 = vmatprep.mubr.f32.mxu1 %v2785_v11 }
 0x2bc   : > { %2276 = vmatmul.mubr.msk.f32.gmra.mrb[20].mxu0 %vm632_vm0, %v2272_v59 }
 0x2bd   : > { %1189 = vmatprep.mubr.f32.mxu0 %v2785_v11 }
 0x2be   : > { %2280 = vmatmul.mubr.msk.f32.gmra.mrb[20].mxu1 %vm632_vm0, %v2272_v59  ;;  %v2282_v59 = vld [vmem:[%s3309_s3 + $0x60] sm:$0xff] }
 0x2bf   : > { %1278 = vmatprep.mubr.f32.mxu1 %v2785_v11 }
 0x2c0   : > { %2277 = vmatmul.mubr.msk.f32.gmra.mrb[22].mxu0 %vm632_vm0, %v2273_v14 }
 0x2c1   : > { %1402 = vmatprep.mubr.f32.mxu0 %v2785_v11 }
 0x2c2   : > { %2281 = vmatmul.mubr.msk.f32.gmra.mrb[22].mxu1 %vm632_vm0, %v2273_v14  ;;  %v2283_v14 = vld [vmem:[%s3309_s3 + $0x68] sm:$0xff] }
 0x2c3   : > { %1491 = vmatprep.mubr.f32.mxu1 %v2785_v11 }
 0x387   : > { %v1173_v39 = vpop.f32.mrb[16].mxu0 }
 0x388   : > { %v1174_v40 = vadd.f32 %v1173_v39, %v1078_v38  ;;  %v1175_v41 = vpop.f32.mrb[17].mxu0  ;;  %v2285_v39 = vld [vmem:[%s3309_s3 + $0x78] sm:$0xff] }
 0x389   : > { %v1262_v42 = vpop.f32.mrb[16].mxu1  ;;  %v1176_v43 = vadd.f32 %v1175_v41, %v1078_v38 }
 0x38a   : > { %2590 = vtanh.f32 %v1174_v40  ;;  %v1263_v44 = vadd.f32 %v1262_v42, %v1078_v38  ;;  %v1264_v45 = vpop.f32.mrb[17].mxu1  ;;  %v1309_v40 = vpop.permute.xlu1 %1308 }
 0x38b   : > { %2592 = vtanh.f32 %v1176_v43  ;;  %v1265_v47 = vadd.f32 %v1264_v45, %v1078_v38  ;;  %v1179_v49 = vpop.f32.mrb[18].mxu0  ;;  %v2284_v38 = vld [vmem:[%s3309_s3 + $0x70] sm:$0xff] }
 0x38c   : > { %2594 = vtanh.f32 %v1263_v44  ;;  %v1180_v50 = vadd.f32 %v1179_v49, %v1083_v46  ;;  %v1181_v10 = vpop.f32.mrb[19].mxu0  ;;  %v1314_v49 = vpop.permute.xlu0 %1313 }
 0x38d   : > { %2596 = vtanh.f32 %v1265_v47  ;;  %v1268_v51 = vpop.f32.mrb[18].mxu1  ;;  %v1182_v12 = vadd.f32 %v1181_v10, %v1083_v46 }
 0x38e   : > { %2598 = vtanh.f32 %v1180_v50  ;;  %v1269_v52 = vadd.f32 %v1268_v51, %v1083_v46  ;;  %v1270_v53 = vpop.f32.mrb[19].mxu1 }
 0x38f   : > { %2600 = vtanh.f32 %v1182_v12  ;;  %v1271_v61 = vadd.f32 %v1270_v53, %v1083_v46  ;;  %v1185_v62 = vpop.f32.mrb[20].mxu0 }
 0x390   : > { %2602 = vtanh.f32 %v1269_v52  ;;  %v1186_v63 = vadd.f32 %v1185_v62, %v1088_v54  ;;  %v1187_v0 = vpop.f32.mrb[21].mxu0  ;;  %v1319_v62 = vpop.permute.xlu1 %1318 }
 0x391   : > { %2604 = vtanh.f32 %v1271_v61  ;;  %v1274_v1 = vpop.f32.mrb[20].mxu1  ;;  %v1188_v13 = vadd.f32 %v1187_v0, %v1088_v54 }
 0x392   : > { %2606 = vtanh.f32 %v1186_v63  ;;  %v1275_v3 = vadd.f32 %v1274_v1, %v1088_v54  ;;  %v1276_v15 = vpop.f32.mrb[21].mxu1 }
 0x393   : > { %2608 = vtanh.f32 %v1188_v13  ;;  %v1277_v4 = vadd.f32 %v1276_v15, %v1088_v54  ;;  %v1191_v5 = vpop.f32.mrb[22].mxu0 }
 0x394   : > { %v2591_v6 = vpop.eup %2590  ;;  %2610 = vtanh.f32 %v1275_v3  ;;  %v1192_v48 = vadd.f32 %v1191_v5, %v1093_v2  ;;  %v1193_v7 = vpop.f32.mrb[23].mxu0 }
 0x395   : > { %v2593_v60 = vpop.eup %2592  ;;  %2612 = vtanh.f32 %v1277_v4  ;;  %v1280_v8 = vpop.f32.mrb[22].mxu1  ;;  %v1194_v9 = vadd.f32 %v1193_v7, %v1093_v2 }
 0x396   : > { %v2595_v19 = vpop.eup %2594  ;;  %2614 = vtanh.f32 %v1192_v48  ;;  %v1281_v20 = vadd.f32 %v1280_v8, %v1093_v2  ;;  %v1282_v21 = vpop.f32.mrb[23].mxu1 }
 0x397   : > { %v2597_v23 = vpop.eup %2596  ;;  %2616 = vtanh.f32 %v1194_v9  ;;  %v1283_v16 = vadd.f32 %v1282_v21, %v1093_v2  ;;  %v1324_v5 = vpop.permute.xlu0 %1323 }
 0x398   : > { %v2599_v17 = vpop.eup %2598  ;;  %2618 = vtanh.f32 %v1281_v20 }
 0x399   : > { %v2601_v24 = vpop.eup %2600  ;;  %2620 = vtanh.f32 %v1283_v16  ;;  %v2376_v18 = vpack.c.bf16 %v2599_v17, %v2591_v6 }
 0x39a   : > { %v2603_v22 = vpop.eup %2602  ;;  %v2374_v25 = vpack.c.bf16 %v2601_v24, %v2593_v60 }
 0x39b   : > { %v2605_v26 = vpop.eup %2604  ;;  %v2384_v27 = vpack.c.bf16 %v2603_v22, %v2595_v19 }
 0x39c   : > { %v2607_v28 = vpop.eup %2606  ;;  %2375 = vmatprep.subr.bf16.mxu0 %v2374_v25  ;;  %v2382_v29 = vpack.c.bf16 %v2605_v26, %v2597_v23 }
 0x39d   : > { %v2609_v30 = vpop.eup %2608  ;;  %2377 = vmatpush1.bf16.msra.mxu0 %v2376_v18 }
 0x39e   : > { %v2611_v31 = vpop.eup %2610  ;;  %2383 = vmatprep.subr.bf16.mxu1 %v2382_v29 }
 0x39f   : > { %v2613_v32 = vpop.eup %2612  ;;  %2385 = vmatpush1.bf16.msra.mxu1 %v2384_v27 }
 0x3a0   : > { %v2615_v58 = vpop.eup %2614 }
 0x3a1   : > { %v2617_v55 = vpop.eup %2616  ;;  %v2380_v33 = vpack.c.bf16 %v2615_v58, %v2607_v28 }
 0x3a2   : > { %v2619_v34 = vpop.eup %2618  ;;  %v2378_v56 = vpack.c.bf16 %v2617_v55, %v2609_v30 }
 0x3a3   : > { %v2621_v35 = vpop.eup %2620  ;;  %v2388_v36 = vpack.c.bf16 %v2619_v34, %v2611_v31 }
 0x3a4   : > { %2379 = vmatprep.subr.bf16.mxu0 %v2378_v56  ;;  %v2386_v57 = vpack.c.bf16 %v2621_v35, %v2613_v32 }
 0x3a5   : > { %2381 = vmatpush1.bf16.msra.mxu0 %v2380_v33 }
 0x3a6   : > { %2387 = vmatprep.subr.bf16.mxu1 %v2386_v57 }
 0x3a7   : > { %2389 = vmatpush1.bf16.msra.mxu1 %v2388_v36 }
 0x3a8   : > { %2286 = vmatmul.mubr.msk.f32.vlgmr.msra.gmra.mrb[24].mxu0 %vm632_vm0, %v2282_v59 }
 0x3a9   : > { %1408 = vmatprep.mubr.f32.mxu0 %v2785_v11 }
 0x3aa   : > { %2290 = vmatmul.mubr.msk.f32.vlgmr.msra.gmra.mrb[24].mxu1 %vm632_vm0, %v2282_v59 }
 0x3ab   : > { %1497 = vmatprep.mubr.f32.mxu1 %v2785_v11 }
 0x3ac   : > { %2287 = vmatmul.mubr.msk.f32.gmra.mrb[26].mxu0 %vm632_vm0, %v2283_v14 }
 0x3ad   : > { %1414 = vmatprep.mubr.f32.mxu0 %v2785_v11 }
 0x3ae   : > { %2291 = vmatmul.mubr.msk.f32.gmra.mrb[26].mxu1 %vm632_vm0, %v2283_v14 }
 0x3af   : > { %1503 = vmatprep.mubr.f32.mxu1 %v2785_v11 }
 0x3b0   : > { %2288 = vmatmul.mubr.msk.f32.gmra.mrb[28].mxu0 %vm632_vm0, %v2284_v38 }
 0x3b1   : > { %1420 = vmatprep.mubr.f32.mxu0 %v2785_v11 }
 0x3b2   : > { %2292 = vmatmul.mubr.msk.f32.gmra.mrb[28].mxu1 %vm632_vm0, %v2284_v38  ;;  %v2294_v38 = vld [vmem:[%s3309_s3 + $0x80] sm:$0xff] }
 0x3b3   : > { %1509 = vmatprep.mubr.f32.mxu1 %v2785_v11 }
 0x3b4   : > { %2289 = vmatmul.mubr.msk.f32.gmra.mrb[30].mxu0 %vm632_vm0, %v2285_v39 }
 0x3b5   : > { %1633 = vmatprep.mubr.f32.mxu0 %v2785_v11 }
 0x3b6   : > { %2293 = vmatmul.mubr.msk.f32.gmra.mrb[30].mxu1 %vm632_vm0, %v2285_v39  ;;  %v2295_v39 = vld [vmem:[%s3309_s3 + $0x88] sm:$0xff] }
 0x3b7   : > { %1722 = vmatprep.mubr.f32.mxu1 %v2785_v11 }
 0x47b   : > { %v1404_v41 = vpop.f32.mrb[24].mxu0 }
 0x47c   : > { %v1405_v42 = vadd.f32 %v1404_v41, %v1309_v40  ;;  %v1406_v43 = vpop.f32.mrb[25].mxu0  ;;  %v2297_v41 = vld [vmem:[%s3309_s3 + $0x98] sm:$0xff] }
 0x47d   : > { %v1493_v44 = vpop.f32.mrb[24].mxu1  ;;  %v1407_v45 = vadd.f32 %v1406_v43, %v1309_v40 }
 0x47e   : > { %2622 = vtanh.f32 %v1405_v42  ;;  %v1494_v46 = vadd.f32 %v1493_v44, %v1309_v40  ;;  %v1495_v47 = vpop.f32.mrb[25].mxu1  ;;  %v1540_v42 = vpop.permute.xlu1 %1539 }
 0x47f   : > { %2624 = vtanh.f32 %v1407_v45  ;;  %v1496_v50 = vadd.f32 %v1495_v47, %v1309_v40  ;;  %v1410_v10 = vpop.f32.mrb[26].mxu0  ;;  %v2296_v40 = vld [vmem:[%s3309_s3 + $0x90] sm:$0xff] }
 0x480   : > { %2626 = vtanh.f32 %v1494_v46  ;;  %v1411_v51 = vadd.f32 %v1410_v10, %v1314_v49  ;;  %v1412_v12 = vpop.f32.mrb[27].mxu0  ;;  %v1545_v10 = vpop.permute.xlu0 %1544 }
 0x481   : > { %2628 = vtanh.f32 %v1496_v50  ;;  %v1499_v52 = vpop.f32.mrb[26].mxu1  ;;  %v1413_v53 = vadd.f32 %v1412_v12, %v1314_v49 }
 0x482   : > { %2630 = vtanh.f32 %v1411_v51  ;;  %v1500_v54 = vadd.f32 %v1499_v52, %v1314_v49  ;;  %v1501_v61 = vpop.f32.mrb[27].mxu1 }
 0x483   : > { %2632 = vtanh.f32 %v1413_v53  ;;  %v1502_v63 = vadd.f32 %v1501_v61, %v1314_v49  ;;  %v1416_v0 = vpop.f32.mrb[28].mxu0 }
 0x484   : > { %2634 = vtanh.f32 %v1500_v54  ;;  %v1417_v1 = vadd.f32 %v1416_v0, %v1319_v62  ;;  %v1418_v13 = vpop.f32.mrb[29].mxu0  ;;  %v1550_v0 = vpop.permute.xlu1 %1549 }
 0x485   : > { %2636 = vtanh.f32 %v1502_v63  ;;  %v1505_v3 = vpop.f32.mrb[28].mxu1  ;;  %v1419_v15 = vadd.f32 %v1418_v13, %v1319_v62 }
 0x486   : > { %2638 = vtanh.f32 %v1417_v1  ;;  %v1506_v2 = vadd.f32 %v1505_v3, %v1319_v62  ;;  %v1507_v4 = vpop.f32.mrb[29].mxu1 }
 0x487   : > { %2640 = vtanh.f32 %v1419_v15  ;;  %v1508_v6 = vadd.f32 %v1507_v4, %v1319_v62  ;;  %v1422_v48 = vpop.f32.mrb[30].mxu0 }
 0x488   : > { %v2623_v7 = vpop.eup %2622  ;;  %2642 = vtanh.f32 %v1506_v2  ;;  %v1423_v60 = vadd.f32 %v1422_v48, %v1324_v5  ;;  %v1424_v8 = vpop.f32.mrb[31].mxu0 }
 0x489   : > { %v2625_v9 = vpop.eup %2624  ;;  %2644 = vtanh.f32 %v1508_v6  ;;  %v1511_v19 = vpop.f32.mrb[30].mxu1  ;;  %v1425_v20 = vadd.f32 %v1424_v8, %v1324_v5 }
 0x48a   : > { %v2627_v21 = vpop.eup %2626  ;;  %2646 = vtanh.f32 %v1423_v60  ;;  %v1512_v23 = vadd.f32 %v1511_v19, %v1324_v5  ;;  %v1513_v16 = vpop.f32.mrb[31].mxu1 }
 0x48b   : > { %v2629_v17 = vpop.eup %2628  ;;  %2648 = vtanh.f32 %v1425_v20  ;;  %v1514_v24 = vadd.f32 %v1513_v16, %v1324_v5  ;;  %v1555_v48 = vpop.permute.xlu0 %1554 }
 0x48c   : > { %v2631_v18 = vpop.eup %2630  ;;  %2650 = vtanh.f32 %v1512_v23 }
 0x48d   : > { %v2633_v22 = vpop.eup %2632  ;;  %2652 = vtanh.f32 %v1514_v24  ;;  %v2392_v25 = vpack.c.bf16 %v2631_v18, %v2623_v7 }
 0x48e   : > { %v2635_v26 = vpop.eup %2634  ;;  %v2390_v27 = vpack.c.bf16 %v2633_v22, %v2625_v9 }
 0x48f   : > { %v2637_v28 = vpop.eup %2636  ;;  %v2400_v29 = vpack.c.bf16 %v2635_v26, %v2627_v21 }
 0x490   : > { %v2639_v30 = vpop.eup %2638  ;;  %2391 = vmatprep.subr.bf16.mxu0 %v2390_v27  ;;  %v2398_v31 = vpack.c.bf16 %v2637_v28, %v2629_v17 }
 0x491   : > { %v2641_v32 = vpop.eup %2640  ;;  %2393 = vmatpush1.bf16.msra.mxu0 %v2392_v25 }
 0x492   : > { %v2643_v58 = vpop.eup %2642  ;;  %2399 = vmatprep.subr.bf16.mxu1 %v2398_v31 }
 0x493   : > { %v2645_v55 = vpop.eup %2644  ;;  %2401 = vmatpush1.bf16.msra.mxu1 %v2400_v29 }
 0x494   : > { %v2647_v33 = vpop.eup %2646 }
 0x495   : > { %v2649_v34 = vpop.eup %2648  ;;  %v2396_v56 = vpack.c.bf16 %v2647_v33, %v2639_v30 }
 0x496   : > { %v2651_v35 = vpop.eup %2650  ;;  %v2394_v36 = vpack.c.bf16 %v2649_v34, %v2641_v32 }
 0x497   : > { %v2653_v57 = vpop.eup %2652  ;;  %v2404_v59 = vpack.c.bf16 %v2651_v35, %v2643_v58 }
 0x498   : > { %2395 = vmatprep.subr.bf16.mxu0 %v2394_v36  ;;  %v2402_v14 = vpack.c.bf16 %v2653_v57, %v2645_v55 }
 0x499   : > { %2397 = vmatpush1.bf16.msra.mxu0 %v2396_v56 }
 0x49a   : > { %2403 = vmatprep.subr.bf16.mxu1 %v2402_v14 }
 0x49b   : > { %2405 = vmatpush1.bf16.msra.mxu1 %v2404_v59 }
 0x49c   : > { %2298 = vmatmul.mubr.msk.f32.vlgmr.msra.gmra.mrb[32].mxu0 %vm632_vm0, %v2294_v38 }
 0x49d   : > { %1639 = vmatprep.mubr.f32.mxu0 %v2785_v11 }
 0x49e   : > { %2302 = vmatmul.mubr.msk.f32.vlgmr.msra.gmra.mrb[32].mxu1 %vm632_vm0, %v2294_v38 }
 0x49f   : > { %1728 = vmatprep.mubr.f32.mxu1 %v2785_v11 }
 0x4a0   : > { %2299 = vmatmul.mubr.msk.f32.gmra.mrb[34].mxu0 %vm632_vm0, %v2295_v39 }
 0x4a1   : > { %1645 = vmatprep.mubr.f32.mxu0 %v2785_v11 }
 0x4a2   : > { %2303 = vmatmul.mubr.msk.f32.gmra.mrb[34].mxu1 %vm632_vm0, %v2295_v39 }
 0x4a3   : > { %1734 = vmatprep.mubr.f32.mxu1 %v2785_v11 }
 0x4a4   : > { %2300 = vmatmul.mubr.msk.f32.gmra.mrb[36].mxu0 %vm632_vm0, %v2296_v40 }
 0x4a5   : > { %1651 = vmatprep.mubr.f32.mxu0 %v2785_v11 }
 0x4a6   : > { %2304 = vmatmul.mubr.msk.f32.gmra.mrb[36].mxu1 %vm632_vm0, %v2296_v40  ;;  %v2306_v40 = vld [vmem:[%s3309_s3 + $0xa0] sm:$0xff] }
 0x4a7   : > { %1740 = vmatprep.mubr.f32.mxu1 %v2785_v11 }
 0x4a8   : > { %2301 = vmatmul.mubr.msk.f32.gmra.mrb[38].mxu0 %vm632_vm0, %v2297_v41 }
 0x4a9   : > { %1864 = vmatprep.mubr.f32.mxu0 %v2785_v11 }
 0x4aa   : > { %2305 = vmatmul.mubr.msk.f32.gmra.mrb[38].mxu1 %vm632_vm0, %v2297_v41  ;;  %v2307_v41 = vld [vmem:[%s3309_s3 + $0xa8] sm:$0xff] }
 0x4ab   : > { %1953 = vmatprep.mubr.f32.mxu1 %v2785_v11 }
 0x56f   : > { %v1635_v43 = vpop.f32.mrb[32].mxu0 }
 0x570   : > { %v1636_v44 = vadd.f32 %v1635_v43, %v1540_v42  ;;  %v1637_v45 = vpop.f32.mrb[33].mxu0  ;;  %v2309_v43 = vld [vmem:[%s3309_s3 + $0xb8] sm:$0xff] }
 0x571   : > { %v1724_v46 = vpop.f32.mrb[32].mxu1  ;;  %v1638_v47 = vadd.f32 %v1637_v45, %v1540_v42 }
 0x572   : > { %2654 = vtanh.f32 %v1636_v44  ;;  %v1725_v49 = vadd.f32 %v1724_v46, %v1540_v42  ;;  %v1726_v50 = vpop.f32.mrb[33].mxu1  ;;  %v1771_v44 = vpop.permute.xlu1 %1770 }
 0x573   : > { %2656 = vtanh.f32 %v1638_v47  ;;  %v1727_v51 = vadd.f32 %v1726_v50, %v1540_v42  ;;  %v1641_v12 = vpop.f32.mrb[34].mxu0  ;;  %v2308_v42 = vld [vmem:[%s3309_s3 + $0xb0] sm:$0xff] }
 0x574   : > { %2658 = vtanh.f32 %v1725_v49  ;;  %v1642_v52 = vadd.f32 %v1641_v12, %v1545_v10  ;;  %v1643_v53 = vpop.f32.mrb[35].mxu0  ;;  %v1776_v12 = vpop.permute.xlu0 %1775 }
 0x575   : > { %2660 = vtanh.f32 %v1727_v51  ;;  %v1730_v54 = vpop.f32.mrb[34].mxu1  ;;  %v1644_v61 = vadd.f32 %v1643_v53, %v1545_v10 }
 0x576   : > { %2662 = vtanh.f32 %v1642_v52  ;;  %v1731_v62 = vadd.f32 %v1730_v54, %v1545_v10  ;;  %v1732_v63 = vpop.f32.mrb[35].mxu1 }
 0x577   : > { %2664 = vtanh.f32 %v1644_v61  ;;  %v1733_v1 = vadd.f32 %v1732_v63, %v1545_v10  ;;  %v1647_v13 = vpop.f32.mrb[36].mxu0 }
 0x578   : > { %2666 = vtanh.f32 %v1731_v62  ;;  %v1648_v3 = vadd.f32 %v1647_v13, %v1550_v0  ;;  %v1649_v15 = vpop.f32.mrb[37].mxu0 }
 0x579   : > { %2668 = vtanh.f32 %v1733_v1  ;;  %v1736_v2 = vpop.f32.mrb[36].mxu1  ;;  %v1650_v4 = vadd.f32 %v1649_v15, %v1550_v0  ;;  %v1781_v1 = vpop.permute.xlu1 %1780 }
 0x57a   : > { %2670 = vtanh.f32 %v1648_v3  ;;  %v1737_v5 = vadd.f32 %v1736_v2, %v1550_v0  ;;  %v1738_v6 = vpop.f32.mrb[37].mxu1 }
 0x57b   : > { %2672 = vtanh.f32 %v1650_v4  ;;  %v1739_v7 = vadd.f32 %v1738_v6, %v1550_v0  ;;  %v1653_v60 = vpop.f32.mrb[38].mxu0 }
 0x57c   : > { %v2655_v8 = vpop.eup %2654  ;;  %2674 = vtanh.f32 %v1737_v5  ;;  %v1654_v9 = vadd.f32 %v1653_v60, %v1555_v48  ;;  %v1655_v19 = vpop.f32.mrb[39].mxu0 }
 0x57d   : > { %v2657_v20 = vpop.eup %2656  ;;  %2676 = vtanh.f32 %v1739_v7  ;;  %v1742_v21 = vpop.f32.mrb[38].mxu1  ;;  %v1656_v23 = vadd.f32 %v1655_v19, %v1555_v48 }
 0x57e   : > { %v2659_v16 = vpop.eup %2658  ;;  %2678 = vtanh.f32 %v1654_v9  ;;  %v1743_v17 = vadd.f32 %v1742_v21, %v1555_v48  ;;  %v1744_v24 = vpop.f32.mrb[39].mxu1 }
 0x57f   : > { %v2661_v18 = vpop.eup %2660  ;;  %2680 = vtanh.f32 %v1656_v23  ;;  %v1745_v22 = vadd.f32 %v1744_v24, %v1555_v48  ;;  %v1786_v7 = vpop.permute.xlu0 %1785 }
 0x580   : > { %v2663_v25 = vpop.eup %2662  ;;  %2682 = vtanh.f32 %v1743_v17 }
 0x581   : > { %v2665_v26 = vpop.eup %2664  ;;  %2684 = vtanh.f32 %v1745_v22  ;;  %v2408_v27 = vpack.c.bf16 %v2663_v25, %v2655_v8 }
 0x582   : > { %v2667_v28 = vpop.eup %2666  ;;  %v2406_v29 = vpack.c.bf16 %v2665_v26, %v2657_v20 }
 0x583   : > { %v2669_v30 = vpop.eup %2668  ;;  %v2416_v31 = vpack.c.bf16 %v2667_v28, %v2659_v16 }
 0x584   : > { %v2671_v32 = vpop.eup %2670  ;;  %2407 = vmatprep.subr.bf16.mxu0 %v2406_v29  ;;  %v2414_v58 = vpack.c.bf16 %v2669_v30, %v2661_v18 }
 0x585   : > { %v2673_v55 = vpop.eup %2672  ;;  %2409 = vmatpush1.bf16.msra.mxu0 %v2408_v27 }
 0x586   : > { %v2675_v33 = vpop.eup %2674  ;;  %2415 = vmatprep.subr.bf16.mxu1 %v2414_v58 }
 0x587   : > { %v2677_v34 = vpop.eup %2676  ;;  %2417 = vmatpush1.bf16.msra.mxu1 %v2416_v31 }
 0x588   : > { %v2679_v56 = vpop.eup %2678 }
 0x589   : > { %v2681_v35 = vpop.eup %2680  ;;  %v2412_v36 = vpack.c.bf16 %v2679_v56, %v2671_v32 }
 0x58a   : > { %v2683_v57 = vpop.eup %2682  ;;  %v2410_v59 = vpack.c.bf16 %v2681_v35, %v2673_v55 }
 0x58b   : > { %v2685_v14 = vpop.eup %2684  ;;  %v2420_v38 = vpack.c.bf16 %v2683_v57, %v2675_v33 }
 0x58c   : > { %2411 = vmatprep.subr.bf16.mxu0 %v2410_v59  ;;  %v2418_v39 = vpack.c.bf16 %v2685_v14, %v2677_v34 }
 0x58d   : > { %2413 = vmatpush1.bf16.msra.mxu0 %v2412_v36 }
 0x58e   : > { %2419 = vmatprep.subr.bf16.mxu1 %v2418_v39 }
 0x58f   : > { %2421 = vmatpush1.bf16.msra.mxu1 %v2420_v38 }
 0x590   : > { %2310 = vmatmul.mubr.msk.f32.vlgmr.msra.gmra.mrb[40].mxu0 %vm632_vm0, %v2306_v40 }
 0x591   : > { %1870 = vmatprep.mubr.f32.mxu0 %v2785_v11 }
 0x592   : > { %2314 = vmatmul.mubr.msk.f32.vlgmr.msra.gmra.mrb[40].mxu1 %vm632_vm0, %v2306_v40 }
 0x593   : > { %1959 = vmatprep.mubr.f32.mxu1 %v2785_v11 }
 0x594   : > { %2311 = vmatmul.mubr.msk.f32.gmra.mrb[42].mxu0 %vm632_vm0, %v2307_v41 }
 0x595   : > { %1876 = vmatprep.mubr.f32.mxu0 %v2785_v11 }
 0x596   : > { %2315 = vmatmul.mubr.msk.f32.gmra.mrb[42].mxu1 %vm632_vm0, %v2307_v41  ;;  %v1994_v41 = vld [vmem:[%s3311_s5] sm:$0x3] }
 0x597   : > { %1965 = vmatprep.mubr.f32.mxu1 %v2785_v11 }
 0x598   : > { %2312 = vmatmul.mubr.msk.f32.gmra.mrb[44].mxu0 %vm632_vm0, %v2308_v42 }
 0x599   : > { %1882 = vmatprep.mubr.f32.mxu0 %v2785_v11 }
 0x59a   : > { %2316 = vmatmul.mubr.msk.f32.gmra.mrb[44].mxu1 %vm632_vm0, %v2308_v42  ;;  %v2786_v42 = vmov 1983009808  }
 0x59b   : > { %1971 = vmatprep.mubr.f32.mxu1 %v2785_v11 }
 0x59c   : > { %2313 = vmatmul.mubr.msk.f32.gmra.mrb[46].mxu0 %vm632_vm0, %v2309_v43 }
 0x59d   : > { %2068 = vmatprep.mubr.f32.mxu0 %v2785_v11 }
 0x59e   : > { %2317 = vmatmul.mubr.msk.f32.gmra.mrb[46].mxu1 %vm632_vm0, %v2309_v43  ;;  %v2153_v43 = vunpack.c.l.s4 %v2786_v42 }
 0x59f   : > { %2139 = vmatprep.mubr.f32.mxu1 %v2785_v11 }
 0x663   : > { %v1866_v45 = vpop.f32.mrb[40].mxu0 }
 0x664   : > { %v1867_v46 = vadd.f32 %v1866_v45, %v1771_v44  ;;  %v1868_v47 = vpop.f32.mrb[41].mxu0  ;;  %v1999_v45 = vpop.permute.xlu1 %1998 }
 0x665   : > { %v1955_v49 = vpop.f32.mrb[40].mxu1  ;;  %v1869_v50 = vadd.f32 %v1868_v47, %v1771_v44 }
 0x666   : > { %2686 = vtanh.f32 %v1867_v46  ;;  %v1956_v10 = vadd.f32 %v1955_v49, %v1771_v44  ;;  %v1957_v51 = vpop.f32.mrb[41].mxu1 }
 0x667   : > { %2688 = vtanh.f32 %v1869_v50  ;;  %v1958_v52 = vadd.f32 %v1957_v51, %v1771_v44  ;;  %v1872_v53 = vpop.f32.mrb[42].mxu0  ;;  %v2154_v44 = vunpack.c.0.s8 %v2153_v43 }
 0x668   : > { %2690 = vtanh.f32 %v1956_v10  ;;  %v1873_v54 = vadd.f32 %v1872_v53, %v1776_v12  ;;  %v1874_v61 = vpop.f32.mrb[43].mxu0 }
 0x669   : > { %2692 = vtanh.f32 %v1958_v52  ;;  %v1961_v62 = vpop.f32.mrb[42].mxu1  ;;  %v1875_v63 = vadd.f32 %v1874_v61, %v1776_v12  ;;  %v2157_v51 = vsub.s32 %v2154_v44, %v2975_v37 }
 0x66a   : > { %2694 = vtanh.f32 %v1873_v54  ;;  %v1962_v11 = vadd.f32 %v1961_v62, %v1776_v12  ;;  %v1963_v0 = vpop.f32.mrb[43].mxu1 }
 0x66b   : > { %2696 = vtanh.f32 %v1875_v63  ;;  %v1964_v13 = vadd.f32 %v1963_v0, %v1776_v12  ;;  %v1878_v3 = vpop.f32.mrb[44].mxu0 }
 0x66c   : > { %2698 = vtanh.f32 %v1962_v11  ;;  %v1879_v15 = vadd.f32 %v1878_v3, %v1781_v1  ;;  %v1880_v2 = vpop.f32.mrb[45].mxu0 }
 0x66d   : > { %2700 = vtanh.f32 %v1964_v13  ;;  %v1967_v4 = vpop.f32.mrb[44].mxu1  ;;  %v1881_v5 = vadd.f32 %v1880_v2, %v1781_v1 }
 0x66e   : > { %2702 = vtanh.f32 %v1879_v15  ;;  %v1968_v6 = vadd.f32 %v1967_v4, %v1781_v1  ;;  %v1969_v48 = vpop.f32.mrb[45].mxu1 }
 0x66f   : > { %2704 = vtanh.f32 %v1881_v5  ;;  %v1970_v60 = vadd.f32 %v1969_v48, %v1781_v1  ;;  %v1884_v8 = vpop.f32.mrb[46].mxu0 }
 0x670   : > { %v2687_v9 = vpop.eup %2686  ;;  %2706 = vtanh.f32 %v1968_v6  ;;  %v1885_v19 = vadd.f32 %v1884_v8, %v1786_v7  ;;  %v1886_v20 = vpop.f32.mrb[47].mxu0 }
 0x671   : > { %v2689_v21 = vpop.eup %2688  ;;  %2708 = vtanh.f32 %v1970_v60  ;;  %v1973_v23 = vpop.f32.mrb[46].mxu1  ;;  %v1887_v16 = vadd.f32 %v1886_v20, %v1786_v7 }
 0x672   : > { %v2691_v17 = vpop.eup %2690  ;;  %2710 = vtanh.f32 %v1885_v19  ;;  %v1974_v24 = vadd.f32 %v1973_v23, %v1786_v7  ;;  %v1975_v18 = vpop.f32.mrb[47].mxu1 }
 0x673   : > { %v2693_v22 = vpop.eup %2692  ;;  %2712 = vtanh.f32 %v1887_v16  ;;  %v1976_v25 = vadd.f32 %v1975_v18, %v1786_v7 }
 0x674   : > { %v2695_v26 = vpop.eup %2694  ;;  %2714 = vtanh.f32 %v1974_v24 }
 0x675   : > { %v2697_v27 = vpop.eup %2696  ;;  %2716 = vtanh.f32 %v1976_v25  ;;  %v2424_v28 = vpack.c.bf16 %v2695_v26, %v2687_v9 }
 0x676   : > { %v2699_v29 = vpop.eup %2698  ;;  %v2422_v30 = vpack.c.bf16 %v2697_v27, %v2689_v21 }
 0x677   : > { %v2701_v31 = vpop.eup %2700  ;;  %v2432_v32 = vpack.c.bf16 %v2699_v29, %v2691_v17 }
 0x678   : > { %v2703_v58 = vpop.eup %2702  ;;  %2423 = vmatprep.subr.bf16.mxu0 %v2422_v30  ;;  %v2430_v55 = vpack.c.bf16 %v2701_v31, %v2693_v22 }
 0x679   : > { %v2705_v33 = vpop.eup %2704  ;;  %2425 = vmatpush1.bf16.msra.mxu0 %v2424_v28 }
 0x67a   : > { %v2707_v34 = vpop.eup %2706  ;;  %2431 = vmatprep.subr.bf16.mxu1 %v2430_v55 }
 0x67b   : > { %v2709_v56 = vpop.eup %2708  ;;  %2433 = vmatpush1.bf16.msra.mxu1 %v2432_v32 }
 0x67c   : > { %v2711_v35 = vpop.eup %2710 }
 0x67d   : > { %v2713_v36 = vpop.eup %2712  ;;  %v2428_v57 = vpack.c.bf16 %v2711_v35, %v2703_v58 }
 0x67e   : > { %v2715_v59 = vpop.eup %2714  ;;  %v2426_v14 = vpack.c.bf16 %v2713_v36, %v2705_v33 }
 0x67f   : > { %v2717_v38 = vpop.eup %2716  ;;  %v2436_v39 = vpack.c.bf16 %v2715_v59, %v2707_v34 }
 0x680   : > { %2427 = vmatprep.subr.bf16.mxu0 %v2426_v14  ;;  %v2434_v40 = vpack.c.bf16 %v2717_v38, %v2709_v56 }
 0x681   : > { %2429 = vmatpush1.bf16.msra.mxu0 %v2428_v57 }
 0x682   : > { %2435 = vmatprep.subr.bf16.mxu1 %v2434_v40 }
 0x683   : > { %2437 = vmatpush1.bf16.msra.mxu1 %v2436_v39 }
 0x684   : > { %2318 = vmatmul.mubr.msk.f32.vlgmr.msra.gmra.mrb[48].mxu0 %vm632_vm0, %v1994_v41 }
 0x686   : > { %2319 = vmatmul.mubr.msk.f32.vlgmr.msra.gmra.mrb[48].mxu1 %vm632_vm0, %v1994_v41 }
 0x757   : > { %v2070_v46 = vpop.f32.mrb[48].mxu0 }
 0x758   : > { %v2071_v47 = vadd.f32 %v2070_v46, %v1999_v45  ;;  %v2072_v49 = vpop.f32.mrb[49].mxu0 }
 0x759   : > { %v2141_v50 = vpop.f32.mrb[48].mxu1  ;;  %v2073_v10 = vadd.f32 %v2072_v49, %v1999_v45 }
 0x75a   : > { %v2142_v12 = vadd.f32 %v2141_v50, %v1999_v45  ;;  %v2143_v52 = vpop.f32.mrb[49].mxu1 }
 0x75b   : > { %v2150_v53 = vcombine.low %v2071_v47, %v2073_v10  ;;  %v2144_v54 = vadd.f32 %v2143_v52, %v1999_v45 }
 0x75d   : > { %v2158_v61 = vrot.slane %v2150_v53, %v2157_v51  ;;  %v2151_v62 = vcombine.low %v2142_v12, %v2144_v54 }
 0x75f   : > { %v2165_v63 = vrot.slane %v2151_v62, %v2157_v51 }
 0x761   : > { %v2166_v11 = vcombine.low %v2158_v61, %v2165_v63 }
 0x763   : > { %2168 = vst [vmem:[%s272_s9] sm:$0xff] %v2166_v11 }
 0x764   : > { %2731 = shalt.err (!%p2728_p3)
}
 0x765   : > { %s2732_s20 = scalar_lea.hbm %s3264_s15, 128  ;;  %s2736_s23 = scalar_lea.hbm %s3313_s7, 256 }
 0x766   : > { %p2733_p4 = scmp.ne.s32.totalorder %s3264_s15, %s2732_s20  ;;  %p2737_p9 = scmp.lt.u32.totalorder %s3264_s15, %s3313_s7 }
 0x767   : > { %p2738_p10 = scmp.lt.u32.totalorder %s2736_s23, %s2732_s20  ;;  %p2740_p12 = scmp.lt.u32.totalorder %s2732_s20, %s3264_s15 }
 0x768   : > { %p2734_p7 = pnand %p2733_p4, %p2866_p5 }
 0x769   : > { %p2739_p11 = por %p2738_p10, %p2737_p9 }
 0x76a   : > { %p2735_p8 = pneg %p2734_p7 }
 0x76b   : > { %p2741_p13 = por %p2740_p12, %p2739_p11 }
 0x76d   : > { %p2742_p0 = pnand %p2741_p13, %p2735_p8 }
 0x76f   : > { %2745 = shalt.err (!%p2742_p0)
}
 0x770   : > { %2438 = dma.vmem_to_hbm [thread:$0]  (%p2866_p5), %s3266_s13, 128, %s3264_s15, %s2170_s16  }
 0x771 PF: > { %p2444_p1 = scmp.ge.s32.totalorder %s2780_s27, 2  ;;  %s2196_s14 = sand.u32 1, %s2768_s24  }
 0x772   : > { %s2197_s8 = scalar_lea.sflag [#allocation3], %s2196_s14 }
 0x773   : > { %p2441_p2 = pnand %p2444_p1, %p2870_p6 }
 0x775   : > { %2763 = dma.done.wait (!%p2441_p2), %s2197_s8, 128  }
 0x776   : > { %2765 = vsyncadd (!%p2441_p2), %s2197_s8, 4294967168  ;;  %p17_p3 = scmp.ge.s32.totalorder %s2853_s30, 4   ;;  %s3316_s24 = smov %s2772_s25 }
 0x777   : > { %s3317_s25 = smov %s2776_s26  ;;  %s3318_s26 = smov %s2864_s10 }
 0x778   : > { %s3319_s27 = smov %s2853_s30  ;;  %19 = sbr.rel (!%p17_p3) target bundleno = 3 (0x3), region = 88 }
 0x77f   :  { %2202 = vsyncpa [#allocation3], 1 }
 0x780   :  { %2204 = vsyncpa [#allocation3 + $0x1], 1 }

</bundles_post_ra>
